<compile_context>
chip_gen: v5e
topology: v5e:2x2
jax: 0.10.0
libtpu: 0.0.40
codegen_flags: <defaults>
</compile_context>

<pallas_src>
import functools

import jax
import jax.numpy as jnp
from jax import lax
from jax.experimental import pallas as pl
from jax.experimental.pallas import tpu as pltpu


def _cab_kernel(x_ref, wb1_ref, b1_ref, wb2_ref, b2_ref, pool_ref,
                wd1_ref, bd1_ref, wd2_ref, bd2_ref, o_ref,
                *, B, H, W, C, K):
    """One grid step == B images; activations lane-dense as (B*H, W*C)."""
    f32 = jnp.float32
    BH = B * H
    WC = W * C
    p = K // 2

    # Row index within its image: used to zero rows whose conv halo would
    # otherwise bleed across image boundaries after the circular roll.
    rmod = lax.broadcasted_iota(jnp.int32, (BH, 1), 0) % H

    def shifted(z, s):                     # (BH, WC) -> rows z[r + s], 0 outside image
        if s == 0:
            return z
        rolled = pltpu.roll(z, (-s) % BH, axis=0)     # rolled[r] = z[(r + s) % BH]
        valid = jnp.logical_and(rmod + s >= 0, rmod + s < H)
        return jnp.where(valid, rolled, jnp.zeros_like(rolled))

    def conv(z, wb_ref, b_ref):            # (BH, WC) -> (BH, WC), one fused MXU matmul
        patches = jnp.concatenate([shifted(z, kh - p) for kh in range(K)],
                                  axis=-1)                       # (BH, K*WC), 128-aligned pieces
        acc = jnp.dot(patches.astype(wb_ref.dtype), wb_ref[...],
                      preferred_element_type=f32)                # (BH, WC)
        return acc + b_ref[...]

    xv = x_ref[...].astype(f32)                                  # (BH, WC)

    a1 = jnp.maximum(conv(xv, wb1_ref, b1_ref), 0.0)             # conv1 + ReLU
    a2 = conv(a1, wb2_ref, b2_ref)                               # conv2

    # ---- CALayer: global average pool + two 1x1 convs + sigmoid gate ----
    # pool matrix already carries the 1/(W*H) factor, so the H-mean is a sum.
    pooled = jnp.dot(a2, pool_ref[...], preferred_element_type=f32)   # (BH, C)
    y = jnp.sum(pooled.reshape(B, H, C), axis=1)                      # (B, C)
    y1 = jnp.maximum(jnp.dot(y, wd1_ref[...], preferred_element_type=f32)
                     + bd1_ref[...], 0.0)                             # (B, C//r)
    y2 = jax.nn.sigmoid(jnp.dot(y1, wd2_ref[...], preferred_element_type=f32)
                        + bd2_ref[...])                               # (B, C)
    gate = jnp.tile(y2, (1, W))                                       # (B, W*C)

    # ---- scale + residual, stored lane-dense ----
    out = a2.reshape(B, H, WC) * gate[:, None, :] + xv.reshape(B, H, WC)
    o_ref[...] = out.reshape(BH, WC).astype(o_ref.dtype)


def _band_conv_weights(w_hwio, width, pad):
    """(K, K, Cin, Cout) -> (K*width*Cin, width*Cout) block-banded matrix.

    With (w, c) merged into lanes, out_row[h] = concat_kh(x_row[h+kh-p]) @ band.
    The W-border handling ('same' zero padding) is baked in by clamping the kw
    diagonals at the borders, so no lane padding is needed in the kernel and
    the contraction length is exactly K*width*Cin (multiple of 256 here).
    """
    K, _, Cin, Cout = w_hwio.shape
    blocks = []
    for kh in range(K):
        band = jnp.zeros((width * Cin, width * Cout), w_hwio.dtype)
        for kw in range(K):
            # ones where w_in = w_out + kw - pad (rows clipped at the borders)
            shift_mat = jnp.eye(width, k=pad - kw, dtype=w_hwio.dtype)
            band = band + jnp.kron(shift_mat, w_hwio[kh, kw])
        blocks.append(band)
    return jnp.concatenate(blocks, axis=0)          # (K*width*Cin, width*Cout)


def _pick_batch_block(N, H):
    """Pick images per grid step.

    Target B*H >= 256 rows so the MXU M dimension is filled (v6e/v7x; >=128
    already fills v5e), keep >= 2 grid steps when that doesn't starve M so
    v7x's two TensorCores both get work, and cap rows per step to bound VMEM.
    """
    divisors = [b for b in range(1, N + 1) if N % b == 0]
    fits = [b for b in divisors if b * H <= 1024]
    if not fits:
        return 1
    split = [b for b in fits if N // b >= 2 and b * H >= 256]
    return max(split) if split else max(fits)


def cab_pallas(x_nhwc, params, kernel_size=3, batch_block=None,
               mxu_dtype=jnp.bfloat16):
    """x_nhwc: (N, H, W, C) float32.  mxu_dtype=jnp.float32 for bit-tight checks."""
    N, H, W, C = x_nhwc.shape
    K = kernel_size
    pad = K // 2
    Cr = params["wd1"].shape[1]
    WC = W * C

    B = _pick_batch_block(N, H) if batch_block is None else batch_block
    assert N % B == 0
    BH = B * H
    steps = N // B

    # Lane-dense activation layout: (N*H, W*C) -> 256 lanes, unmasked stores.
    x2d = x_nhwc.reshape(N * H, WC)

    # Precompute MXU operands once in the wrapper.
    wb1 = _band_conv_weights(params["w1"], W, pad).astype(mxu_dtype)  # (K*WC, WC)
    wb2 = _band_conv_weights(params["w2"], W, pad).astype(mxu_dtype)
    b1w = jnp.tile(params["b1"], (1, W))                              # (1, W*C)
    b2w = jnp.tile(params["b2"], (1, W))                              # (1, W*C)
    pool = jnp.tile(jnp.eye(C, dtype=jnp.float32), (W, 1)) / (W * H)  # (W*C, C)

    kernel = functools.partial(_cab_kernel, B=B, H=H, W=W, C=C, K=K)
    const2 = lambda n: (0, 0)

    wbytes = jnp.dtype(mxu_dtype).itemsize
    cost = pl.CostEstimate(
        flops=2 * (2 * (N * H) * (K * WC) * WC) + 2 * (N * H) * WC * C,
        transcendentals=N * C,
        bytes_accessed=2 * N * H * WC * 4 + 2 * K * WC * WC * wbytes
                       + (WC * C + 2 * WC + 2 * C * Cr + Cr + C) * 4)

    out = pl.pallas_call(
        kernel,
        out_shape=jax.ShapeDtypeStruct((N * H, WC), x_nhwc.dtype),
        grid_spec=pltpu.PrefetchScalarGridSpec(
            num_scalar_prefetch=0,
            grid=(steps,),
            in_specs=[
                pl.BlockSpec((BH, WC), lambda n: (n, 0)),     # x (lane-dense)
                pl.BlockSpec((K * WC, WC), const2),           # conv1 band weights
                pl.BlockSpec((1, WC), const2),                # conv1 bias (wide)
                pl.BlockSpec((K * WC, WC), const2),           # conv2 band weights
                pl.BlockSpec((1, WC), const2),                # conv2 bias (wide)
                pl.BlockSpec((WC, C), const2),                # pooling matrix (mean folded)
                pl.BlockSpec((C, Cr), const2),                # CA squeeze weight
                pl.BlockSpec((1, Cr), const2),                # CA squeeze bias
                pl.BlockSpec((Cr, C), const2),                # CA excite weight
                pl.BlockSpec((1, C), const2),                 # CA excite bias
            ],
            out_specs=pl.BlockSpec((BH, WC), lambda n: (n, 0)),
        ),
        compiler_params=pltpu.CompilerParams(
            dimension_semantics=("parallel",)),
        cost_estimate=cost,
    )(x2d, wb1, b1w, wb2, b2w, pool,
      params["wd1"], params["bd1"], params["wd2"], params["bd2"])
    return out.reshape(N, H, W, C)


def cab_reference(x_nhwc, params):
    """Pure-JAX reference (NHWC) for correctness check."""
    dn = ("NHWC", "HWIO", "NHWC")
    r = lax.conv_general_dilated(x_nhwc, params["w1"], (1, 1), "SAME",
                                 dimension_numbers=dn) + params["b1"]
    r = jnp.maximum(r, 0.0)
    r = lax.conv_general_dilated(r, params["w2"], (1, 1), "SAME",
                                 dimension_numbers=dn) + params["b2"]
    y = jnp.mean(r, axis=(1, 2), keepdims=True)                    # (N,1,1,C)
    y1 = jnp.maximum(jnp.einsum("nijc,cd->nijd", y, params["wd1"])
                     + params["bd1"], 0.0)
    y2 = jax.nn.sigmoid(jnp.einsum("nijd,dc->nijc", y1, params["wd2"])
                        + params["bd2"])
    return r * y2 + x_nhwc


def init_params(key, n_feat=16, kernel_size=3, reduction=8):
    C, K, Cr = n_feat, kernel_size, n_feat // reduction
    ks = jax.random.split(key, 8)
    s = 0.1
    return {
        "w1": s * jax.random.normal(ks[0], (K, K, C, C), jnp.float32),
        "b1": s * jax.random.normal(ks[1], (1, C), jnp.float32),
        "w2": s * jax.random.normal(ks[2], (K, K, C, C), jnp.float32),
        "b2": s * jax.random.normal(ks[3], (1, C), jnp.float32),
        "wd1": s * jax.random.normal(ks[4], (C, Cr), jnp.float32),
        "bd1": s * jax.random.normal(ks[5], (1, Cr), jnp.float32),
        "wd2": s * jax.random.normal(ks[6], (Cr, C), jnp.float32),
        "bd2": s * jax.random.normal(ks[7], (1, C), jnp.float32),
    }


if __name__ == "__main__":
    key = jax.random.PRNGKey(0)
    kx, kp = jax.random.split(key)

    N, C, H, W = 2, 16, 16, 16      # n_feat=16, reduction=8, kernel_size=3
    x_nchw = jax.random.normal(kx, (N, C, H, W), jnp.float32)
    x_nhwc = jnp.transpose(x_nchw, (0, 2, 3, 1))   # NCHW -> NHWC (glue)

    params = init_params(kp, n_feat=C, kernel_size=3, reduction=8)
    ref = cab_reference(x_nhwc, params)

    # f32 MXU path: bit-tight check of the algorithm.
    out_f32 = jax.block_until_ready(
        cab_pallas(x_nhwc, params, kernel_size=3, mxu_dtype=jnp.float32))
    assert out_f32.shape == (N, H, W, C)
    err_f32 = float(jnp.max(jnp.abs(out_f32 - ref)))
    assert err_f32 < 2e-4, err_f32

    # bf16 MXU path (default / fast): looser tolerance for bf16 operands.
    out_bf16 = jax.block_until_ready(cab_pallas(x_nhwc, params, kernel_size=3))
    err_bf16 = float(jnp.max(jnp.abs(out_bf16 - ref)))
    assert err_bf16 < 5e-2, err_bf16

    print("KERNEL_OK")
</pallas_src>

<mosaic_0001>
module attributes {stable_mosaic.version = 11 : i64} {
  func.func @_cab_kernel(%arg0: i32, %arg1: memref<32x256xf32, #tpu.memory_space<vmem>>, %arg2: memref<768x256xf32, #tpu.memory_space<vmem>>, %arg3: memref<1x256xf32, #tpu.memory_space<vmem>>, %arg4: memref<768x256xf32, #tpu.memory_space<vmem>>, %arg5: memref<1x256xf32, #tpu.memory_space<vmem>>, %arg6: memref<256x16xf32, #tpu.memory_space<vmem>>, %arg7: memref<16x2xf32, #tpu.memory_space<vmem>>, %arg8: memref<1x2xf32, #tpu.memory_space<vmem>>, %arg9: memref<2x16xf32, #tpu.memory_space<vmem>>, %arg10: memref<1x16xf32, #tpu.memory_space<vmem>>, %arg11: memref<32x256xf32, #tpu.memory_space<vmem>>) attributes {dimension_semantics = [#tpu.dimension_semantics<parallel>], iteration_bounds = array<i64: 1>, scalar_prefetch = 0 : i64, scratch_operands = 0 : i64, tpu.core_type = #tpu.core_type<tc>, window_params = [{transform_indices = @transform_0, window_bounds = array<i64: 32, 256>}, {pipeline_mode = #tpu.pipeline_mode<synchronous>, transform_indices = @transform_1, window_bounds = array<i64: 768, 256>}, {pipeline_mode = #tpu.pipeline_mode<synchronous>, transform_indices = @transform_2, window_bounds = array<i64: 1, 256>}, {pipeline_mode = #tpu.pipeline_mode<synchronous>, transform_indices = @transform_3, window_bounds = array<i64: 768, 256>}, {pipeline_mode = #tpu.pipeline_mode<synchronous>, transform_indices = @transform_4, window_bounds = array<i64: 1, 256>}, {pipeline_mode = #tpu.pipeline_mode<synchronous>, transform_indices = @transform_5, window_bounds = array<i64: 256, 16>}, {pipeline_mode = #tpu.pipeline_mode<synchronous>, transform_indices = @transform_6, window_bounds = array<i64: 16, 2>}, {pipeline_mode = #tpu.pipeline_mode<synchronous>, transform_indices = @transform_7, window_bounds = array<i64: 1, 2>}, {pipeline_mode = #tpu.pipeline_mode<synchronous>, transform_indices = @transform_8, window_bounds = array<i64: 2, 16>}, {pipeline_mode = #tpu.pipeline_mode<synchronous>, transform_indices = @transform_9, window_bounds = array<i64: 1, 16>}, {transform_indices = @transform_10, window_bounds = array<i64: 32, 256>}]} {
    %0 = tpu.iota {dimensions = array<i32: 0>} : vector<32x1xi32>
    %c16_i32 = arith.constant 16 : i32
    %c0_i32 = arith.constant 0 : i32
    %1 = arith.cmpi eq, %c16_i32, %c0_i32 : i32
    %c1_i32 = arith.constant 1 : i32
    %2 = arith.select %1, %c1_i32, %c16_i32 : i32
    %3 = vector.broadcast %2 : i32 to vector<32x1xi32>
    %4 = arith.remsi %0, %3 : vector<32x1xi32>
    %c0_i32_0 = arith.constant 0 : i32
    %5 = vector.broadcast %c0_i32_0 : i32 to vector<32x1xi32>
    %6 = arith.cmpi ne, %4, %5 : vector<32x1xi32>
    %c0_i32_1 = arith.constant 0 : i32
    %7 = vector.broadcast %c0_i32_1 : i32 to vector<32x1xi32>
    %8 = arith.cmpi slt, %4, %7 : vector<32x1xi32>
    %c0_i32_2 = arith.constant 0 : i32
    %9 = arith.cmpi slt, %2, %c0_i32_2 : i32
    %10 = vector.broadcast %9 : i1 to vector<32x1xi1>
    %11 = vector.broadcast %10 : vector<32x1xi1> to vector<32x1xi1>
    %12 = arith.xori %8, %11 : vector<32x1xi1>
    %13 = arith.andi %12, %6 : vector<32x1xi1>
    %14 = vector.broadcast %2 : i32 to vector<32x1xi32>
    %15 = arith.addi %4, %14 : vector<32x1xi32>
    %16 = arith.select %13, %15, %4 : vector<32x1xi1>, vector<32x1xi32>
    %c0 = arith.constant 0 : index
    %c0_3 = arith.constant 0 : index
    %17 = vector.load %arg1[%c0, %c0_3] : memref<32x256xf32, #tpu.memory_space<vmem>>, vector<32x256xf32>
    %c1_i32_4 = arith.constant 1 : i32
    %18 = tpu.dynamic_rotate %17 by %c1_i32_4 dim 0 : vector<32x256xf32>, i32 -> vector<32x256xf32>
    %c-1_i32 = arith.constant -1 : i32
    %19 = vector.broadcast %c-1_i32 : i32 to vector<32x1xi32>
    %20 = arith.addi %16, %19 : vector<32x1xi32>
    %c0_i32_5 = arith.constant 0 : i32
    %21 = vector.broadcast %c0_i32_5 : i32 to vector<32x1xi32>
    %22 = arith.cmpi sge, %20, %21 : vector<32x1xi32>
    %c-1_i32_6 = arith.constant -1 : i32
    %23 = vector.broadcast %c-1_i32_6 : i32 to vector<32x1xi32>
    %24 = arith.addi %16, %23 : vector<32x1xi32>
    %c16_i32_7 = arith.constant 16 : i32
    %25 = vector.broadcast %c16_i32_7 : i32 to vector<32x1xi32>
    %26 = arith.cmpi slt, %24, %25 : vector<32x1xi32>
    %27 = arith.andi %22, %26 : vector<32x1xi1>
    %cst = arith.constant 0.000000e+00 : f32
    %28 = vector.broadcast %cst : f32 to vector<32x256xf32>
    %29 = vector.shape_cast %27 : vector<32x1xi1> to vector<32x1xi1>
    %30 = vector.broadcast %29 : vector<32x1xi1> to vector<32x256xi1>
    %31 = arith.select %30, %18, %28 : vector<32x256xi1>, vector<32x256xf32>
    %c31_i32 = arith.constant 31 : i32
    %32 = tpu.dynamic_rotate %17 by %c31_i32 dim 0 : vector<32x256xf32>, i32 -> vector<32x256xf32>
    %c1_i32_8 = arith.constant 1 : i32
    %33 = vector.broadcast %c1_i32_8 : i32 to vector<32x1xi32>
    %34 = arith.addi %16, %33 : vector<32x1xi32>
    %c0_i32_9 = arith.constant 0 : i32
    %35 = vector.broadcast %c0_i32_9 : i32 to vector<32x1xi32>
    %36 = arith.cmpi sge, %34, %35 : vector<32x1xi32>
    %c1_i32_10 = arith.constant 1 : i32
    %37 = vector.broadcast %c1_i32_10 : i32 to vector<32x1xi32>
    %38 = arith.addi %16, %37 : vector<32x1xi32>
    %c16_i32_11 = arith.constant 16 : i32
    %39 = vector.broadcast %c16_i32_11 : i32 to vector<32x1xi32>
    %40 = arith.cmpi slt, %38, %39 : vector<32x1xi32>
    %41 = arith.andi %36, %40 : vector<32x1xi1>
    %cst_12 = arith.constant 0.000000e+00 : f32
    %42 = vector.broadcast %cst_12 : f32 to vector<32x256xf32>
    %43 = vector.shape_cast %41 : vector<32x1xi1> to vector<32x1xi1>
    %44 = vector.broadcast %43 : vector<32x1xi1> to vector<32x256xi1>
    %45 = arith.select %44, %32, %42 : vector<32x256xi1>, vector<32x256xf32>
    %46 = tpu.concatenate %31, %17, %45 in 1 : vector<32x256xf32>, vector<32x256xf32>, vector<32x256xf32> -> vector<32x768xf32>
    %c0_13 = arith.constant 0 : index
    %c0_14 = arith.constant 0 : index
    %47 = vector.load %arg2[%c0_13, %c0_14] : memref<768x256xf32, #tpu.memory_space<vmem>>, vector<768x256xf32>
    %cst_15 = arith.constant dense<0.000000e+00> : vector<32x256xf32>
    %48 = tpu.matmul %46, %47, %cst_15 {dimension_numbers = #tpu.dot_dimension_numbers<[1], [0], [0], [1], [0, 0, 1, 1], [], []>} : vector<32x768xf32>, vector<768x256xf32>, vector<32x256xf32> -> vector<32x256xf32>
    %c0_16 = arith.constant 0 : index
    %c0_17 = arith.constant 0 : index
    %49 = vector.load %arg3[%c0_16, %c0_17] : memref<1x256xf32, #tpu.memory_space<vmem>>, vector<1x256xf32>
    %50 = vector.broadcast %49 : vector<1x256xf32> to vector<32x256xf32>
    %51 = arith.addf %48, %50 : vector<32x256xf32>
    %cst_18 = arith.constant 0.000000e+00 : f32
    %52 = vector.broadcast %cst_18 : f32 to vector<32x256xf32>
    %53 = arith.maximumf %51, %52 : vector<32x256xf32>
    %c1_i32_19 = arith.constant 1 : i32
    %54 = tpu.dynamic_rotate %53 by %c1_i32_19 dim 0 : vector<32x256xf32>, i32 -> vector<32x256xf32>
    %c-1_i32_20 = arith.constant -1 : i32
    %55 = vector.broadcast %c-1_i32_20 : i32 to vector<32x1xi32>
    %56 = arith.addi %16, %55 : vector<32x1xi32>
    %c0_i32_21 = arith.constant 0 : i32
    %57 = vector.broadcast %c0_i32_21 : i32 to vector<32x1xi32>
    %58 = arith.cmpi sge, %56, %57 : vector<32x1xi32>
    %c-1_i32_22 = arith.constant -1 : i32
    %59 = vector.broadcast %c-1_i32_22 : i32 to vector<32x1xi32>
    %60 = arith.addi %16, %59 : vector<32x1xi32>
    %c16_i32_23 = arith.constant 16 : i32
    %61 = vector.broadcast %c16_i32_23 : i32 to vector<32x1xi32>
    %62 = arith.cmpi slt, %60, %61 : vector<32x1xi32>
    %63 = arith.andi %58, %62 : vector<32x1xi1>
    %cst_24 = arith.constant 0.000000e+00 : f32
    %64 = vector.broadcast %cst_24 : f32 to vector<32x256xf32>
    %65 = vector.shape_cast %63 : vector<32x1xi1> to vector<32x1xi1>
    %66 = vector.broadcast %65 : vector<32x1xi1> to vector<32x256xi1>
    %67 = arith.select %66, %54, %64 : vector<32x256xi1>, vector<32x256xf32>
    %c31_i32_25 = arith.constant 31 : i32
    %68 = tpu.dynamic_rotate %53 by %c31_i32_25 dim 0 : vector<32x256xf32>, i32 -> vector<32x256xf32>
    %c1_i32_26 = arith.constant 1 : i32
    %69 = vector.broadcast %c1_i32_26 : i32 to vector<32x1xi32>
    %70 = arith.addi %16, %69 : vector<32x1xi32>
    %c0_i32_27 = arith.constant 0 : i32
    %71 = vector.broadcast %c0_i32_27 : i32 to vector<32x1xi32>
    %72 = arith.cmpi sge, %70, %71 : vector<32x1xi32>
    %c1_i32_28 = arith.constant 1 : i32
    %73 = vector.broadcast %c1_i32_28 : i32 to vector<32x1xi32>
    %74 = arith.addi %16, %73 : vector<32x1xi32>
    %c16_i32_29 = arith.constant 16 : i32
    %75 = vector.broadcast %c16_i32_29 : i32 to vector<32x1xi32>
    %76 = arith.cmpi slt, %74, %75 : vector<32x1xi32>
    %77 = arith.andi %72, %76 : vector<32x1xi1>
    %cst_30 = arith.constant 0.000000e+00 : f32
    %78 = vector.broadcast %cst_30 : f32 to vector<32x256xf32>
    %79 = vector.shape_cast %77 : vector<32x1xi1> to vector<32x1xi1>
    %80 = vector.broadcast %79 : vector<32x1xi1> to vector<32x256xi1>
    %81 = arith.select %80, %68, %78 : vector<32x256xi1>, vector<32x256xf32>
    %82 = tpu.concatenate %67, %53, %81 in 1 : vector<32x256xf32>, vector<32x256xf32>, vector<32x256xf32> -> vector<32x768xf32>
    %c0_31 = arith.constant 0 : index
    %c0_32 = arith.constant 0 : index
    %83 = vector.load %arg4[%c0_31, %c0_32] : memref<768x256xf32, #tpu.memory_space<vmem>>, vector<768x256xf32>
    %cst_33 = arith.constant dense<0.000000e+00> : vector<32x256xf32>
    %84 = tpu.matmul %82, %83, %cst_33 {dimension_numbers = #tpu.dot_dimension_numbers<[1], [0], [0], [1], [0, 0, 1, 1], [], []>} : vector<32x768xf32>, vector<768x256xf32>, vector<32x256xf32> -> vector<32x256xf32>
    %c0_34 = arith.constant 0 : index
    %c0_35 = arith.constant 0 : index
    %85 = vector.load %arg5[%c0_34, %c0_35] : memref<1x256xf32, #tpu.memory_space<vmem>>, vector<1x256xf32>
    %86 = vector.broadcast %85 : vector<1x256xf32> to vector<32x256xf32>
    %87 = arith.addf %84, %86 : vector<32x256xf32>
    %c0_36 = arith.constant 0 : index
    %c0_37 = arith.constant 0 : index
    %88 = vector.load %arg6[%c0_36, %c0_37] : memref<256x16xf32, #tpu.memory_space<vmem>>, vector<256x16xf32>
    %cst_38 = arith.constant dense<0.000000e+00> : vector<32x16xf32>
    %89 = tpu.matmul %87, %88, %cst_38 {dimension_numbers = #tpu.dot_dimension_numbers<[1], [0], [0], [1], [0, 0, 1, 1], [], []>} : vector<32x256xf32>, vector<256x16xf32>, vector<32x16xf32> -> vector<32x16xf32>
    %90 = vector.shape_cast %89 : vector<32x16xf32> to vector<2x16x16xf32>
    %cst_39 = arith.constant dense<0.000000e+00> : vector<2x16xf32>
    %91 = vector.multi_reduction <add>, %90, %cst_39 [1] : vector<2x16x16xf32> to vector<2x16xf32>
    %c0_40 = arith.constant 0 : index
    %c0_41 = arith.constant 0 : index
    %92 = vector.load %arg7[%c0_40, %c0_41] : memref<16x2xf32, #tpu.memory_space<vmem>>, vector<16x2xf32>
    %cst_42 = arith.constant dense<0.000000e+00> : vector<2x2xf32>
    %93 = tpu.matmul %91, %92, %cst_42 {dimension_numbers = #tpu.dot_dimension_numbers<[1], [0], [0], [1], [0, 0, 1, 1], [], []>} : vector<2x16xf32>, vector<16x2xf32>, vector<2x2xf32> -> vector<2x2xf32>
    %c0_43 = arith.constant 0 : index
    %c0_44 = arith.constant 0 : index
    %94 = vector.load %arg8[%c0_43, %c0_44] : memref<1x2xf32, #tpu.memory_space<vmem>>, vector<1x2xf32>
    %95 = vector.broadcast %94 : vector<1x2xf32> to vector<2x2xf32>
    %96 = arith.addf %93, %95 : vector<2x2xf32>
    %cst_45 = arith.constant 0.000000e+00 : f32
    %97 = vector.broadcast %cst_45 : f32 to vector<2x2xf32>
    %98 = arith.maximumf %96, %97 : vector<2x2xf32>
    %c0_46 = arith.constant 0 : index
    %c0_47 = arith.constant 0 : index
    %99 = vector.load %arg9[%c0_46, %c0_47] : memref<2x16xf32, #tpu.memory_space<vmem>>, vector<2x16xf32>
    %cst_48 = arith.constant dense<0.000000e+00> : vector<2x16xf32>
    %100 = tpu.matmul %98, %99, %cst_48 {dimension_numbers = #tpu.dot_dimension_numbers<[1], [0], [0], [1], [0, 0, 1, 1], [], []>} : vector<2x2xf32>, vector<2x16xf32>, vector<2x16xf32> -> vector<2x16xf32>
    %c0_49 = arith.constant 0 : index
    %c0_50 = arith.constant 0 : index
    %101 = vector.load %arg10[%c0_49, %c0_50] : memref<1x16xf32, #tpu.memory_space<vmem>>, vector<1x16xf32>
    %102 = vector.broadcast %101 : vector<1x16xf32> to vector<2x16xf32>
    %103 = arith.addf %100, %102 : vector<2x16xf32>
    %104 = arith.negf %103 : vector<2x16xf32>
    %105 = math.exp %104 : vector<2x16xf32>
    %cst_51 = arith.constant 1.000000e+00 : f32
    %106 = vector.broadcast %cst_51 : f32 to vector<2x16xf32>
    %107 = arith.addf %106, %105 : vector<2x16xf32>
    %108 = arith.divf %106, %107 : vector<2x16xf32>
    %109 = tpu.concatenate %108, %108, %108, %108, %108, %108, %108, %108, %108, %108, %108, %108, %108, %108, %108, %108 in 1 : vector<2x16xf32>, vector<2x16xf32>, vector<2x16xf32>, vector<2x16xf32>, vector<2x16xf32>, vector<2x16xf32>, vector<2x16xf32>, vector<2x16xf32>, vector<2x16xf32>, vector<2x16xf32>, vector<2x16xf32>, vector<2x16xf32>, vector<2x16xf32>, vector<2x16xf32>, vector<2x16xf32>, vector<2x16xf32> -> vector<2x256xf32>
    %110 = vector.shape_cast %87 : vector<32x256xf32> to vector<2x16x256xf32>
    %111 = vector.shape_cast %109 : vector<2x256xf32> to vector<2x1x256xf32>
    %112 = vector.broadcast %111 : vector<2x1x256xf32> to vector<2x16x256xf32>
    %113 = arith.mulf %110, %112 : vector<2x16x256xf32>
    %114 = vector.shape_cast %17 : vector<32x256xf32> to vector<2x16x256xf32>
    %115 = arith.addf %113, %114 : vector<2x16x256xf32>
    %116 = vector.shape_cast %115 : vector<2x16x256xf32> to vector<32x256xf32>
    %c0_52 = arith.constant 0 : index
    %c0_53 = arith.constant 0 : index
    %117 = vector.load %arg11[%c0_52, %c0_53] : memref<32x256xf32, #tpu.memory_space<vmem>>, vector<32x256xf32>
    tpu.vector_store %arg11[%c0_52, %c0_53], %116 {strides = array<i32>} : memref<32x256xf32, #tpu.memory_space<vmem>>, vector<32x256xf32>,
    return
  }
  func.func @transform_0(%arg0: i32) -> (i32, i32) {
    %c0_i32 = arith.constant 0 : i32
    %c0_i32_0 = arith.constant 0 : i32
    return %arg0, %c0_i32 : i32, i32
  }
  func.func @transform_1(%arg0: i32) -> (i32, i32) {
    %c0_i32 = arith.constant 0 : i32
    %c0_i32_0 = arith.constant 0 : i32
    %c0_i32_1 = arith.constant 0 : i32
    return %c0_i32, %c0_i32_0 : i32, i32
  }
  func.func @transform_2(%arg0: i32) -> (i32, i32) {
    %c0_i32 = arith.constant 0 : i32
    %c0_i32_0 = arith.constant 0 : i32
    %c0_i32_1 = arith.constant 0 : i32
    return %c0_i32, %c0_i32_0 : i32, i32
  }
  func.func @transform_3(%arg0: i32) -> (i32, i32) {
    %c0_i32 = arith.constant 0 : i32
    %c0_i32_0 = arith.constant 0 : i32
    %c0_i32_1 = arith.constant 0 : i32
    return %c0_i32, %c0_i32_0 : i32, i32
  }
  func.func @transform_4(%arg0: i32) -> (i32, i32) {
    %c0_i32 = arith.constant 0 : i32
    %c0_i32_0 = arith.constant 0 : i32
    %c0_i32_1 = arith.constant 0 : i32
    return %c0_i32, %c0_i32_0 : i32, i32
  }
  func.func @transform_5(%arg0: i32) -> (i32, i32) {
    %c0_i32 = arith.constant 0 : i32
    %c0_i32_0 = arith.constant 0 : i32
    %c0_i32_1 = arith.constant 0 : i32
    return %c0_i32, %c0_i32_0 : i32, i32
  }
  func.func @transform_6(%arg0: i32) -> (i32, i32) {
    %c0_i32 = arith.constant 0 : i32
    %c0_i32_0 = arith.constant 0 : i32
    %c0_i32_1 = arith.constant 0 : i32
    return %c0_i32, %c0_i32_0 : i32, i32
  }
  func.func @transform_7(%arg0: i32) -> (i32, i32) {
    %c0_i32 = arith.constant 0 : i32
    %c0_i32_0 = arith.constant 0 : i32
    %c0_i32_1 = arith.constant 0 : i32
    return %c0_i32, %c0_i32_0 : i32, i32
  }
  func.func @transform_8(%arg0: i32) -> (i32, i32) {
    %c0_i32 = arith.constant 0 : i32
    %c0_i32_0 = arith.constant 0 : i32
    %c0_i32_1 = arith.constant 0 : i32
    return %c0_i32, %c0_i32_0 : i32, i32
  }
  func.func @transform_9(%arg0: i32) -> (i32, i32) {
    %c0_i32 = arith.constant 0 : i32
    %c0_i32_0 = arith.constant 0 : i32
    %c0_i32_1 = arith.constant 0 : i32
    return %c0_i32, %c0_i32_0 : i32, i32
  }
  func.func @transform_10(%arg0: i32) -> (i32, i32) {
    %c0_i32 = arith.constant 0 : i32
    %c0_i32_0 = arith.constant 0 : i32
    return %arg0, %c0_i32 : i32, i32
  }
}

</mosaic_0001>

<bundles_post_ra>
// kernel: tpu_custom_call.1
= control target key start
LH: loop header
LB: loop body
LE: loop exit
PB: predicated region body
PF: predicated region fallthrough
CT: control target
= control target key end

     0   :  { %15 = vsyncpa [#allocation3], 0  ;;  %s2594_s0 = inlined_call_operand.vmem [shape: f32[32,256], index: 0, kind: input, shape index: {}]   ;;  %s2595_s1 = inlined_call_operand.hbm [shape: f32[768,256], index: 1, kind: input, shape index: {}]   ;;  %s2596_s2 = inlined_call_operand.vmem [shape: f32[1,256], index: 2, kind: input, shape index: {}]   ;;  %s2597_s3 = inlined_call_operand.hbm [shape: f32[768,256], index: 3, kind: input, shape index: {}]   ;;  %s2598_s4 = inlined_call_operand.vmem [shape: f32[1,256], index: 4, kind: input, shape index: {}]   ;;  %s2599_s5 = inlined_call_operand.vmem [shape: f32[256,16], index: 5, kind: input, shape index: {}]   ;;  %s2600_s6 = inlined_call_operand.vmem [shape: f32[16,2], index: 6, kind: input, shape index: {}]   ;;  %s2601_s7 = inlined_call_operand.vmem [shape: f32[1,2], index: 7, kind: input, shape index: {}]   ;;  %s2602_s8 = inlined_call_operand.vmem [shape: f32[2,16], index: 8, kind: input, shape index: {}]   ;;  %s2603_s9 = inlined_call_operand.vmem [shape: f32[1,16], index: 9, kind: input, shape index: {}]   ;;  %s2604_s10 = inlined_call_operand.hbm [shape: f32[32,256], index: 10, kind: output, shape index: {}]  }
   0x1   :  { %16 = vsyncpa [#allocation6], 0 }
   0x2   :  { %17 = vsyncpa [#allocation4], 0  ;;  %s24_s15 = sshll.u32 %s2595_s1, 4  ;;  %s1833_s16 = smov [#allocation2]   ;;  %s25_s15 = int_to_ptr.hbm [resolvable:$true] %s24_s15 }
   0x3   :  { %s26_s17 = sshll.u32 %s1833_s16, 4  ;;  %s39_s20 = sshll.u32 %s2597_s3, 4  ;;  %s27_s17 = int_to_ptr.vmem [resolvable:$true] %s26_s17  ;;  %s40_s20 = int_to_ptr.hbm [resolvable:$true] %s39_s20 }
   0x4   :  { %s1834_s21 = smov 256   ;;  %s1835_s22 = smov 16  }
   0x5   :  { %32 = dma.hbm_to_vmem [thread:$0]  %s25_s15, 24576, %s27_s17, [#allocation3], %s1834_s21, %s1834_s21, %s1835_s22  }
   0x6   :  { %s1836_s23 = smov [#allocation5]  }
   0x7   :  { %s41_s24 = sshll.u32 %s1836_s23, 4  ;;  %s42_s24 = int_to_ptr.vmem [resolvable:$true] %s41_s24 }
   0x8   :  { %47 = dma.hbm_to_vmem [thread:$0]  %s40_s20, 24576, %s42_s24, [#allocation6], %s1834_s21, %s1834_s21, %s1835_s22  }
   0x9   :  { %1827 = dma.done.wait [#allocation3], 24576  }
   0xa   :  { %1828 = vsyncadd [#allocation3], 4294942720 }
   0xb   :  { %1829 = dma.done.wait [#allocation6], 24576  }
   0xc   :  { %1830 = vsyncadd [#allocation6], 4294942720  ;;  %v257_v0 = vld [vmem:[#allocation2 + $0xf0] sm:$0xff]  ;;  %v255_v2 = vld [vmem:[#allocation2 + $0xe0] sm:$0xff]  ;;  %v68_v32 = vlaneseq  ;;  %vm1526_vm6 = vcmask 1041408   ;;  %vm1465_vm7 = vcmask 130048  }
   0xd   :  { %v321_v1 = vld [vmem:[#allocation2 + $0x2f0] sm:$0xff]  ;;  %425 = vmatpush.msra.mxu0 %v257_v0  ;;  %v319_v4 = vld [vmem:[#allocation2 + $0x2e0] sm:$0xff]  ;;  %v1931_v0 = vld [vmem:[%s2594_s0 + $0x8] sm:$0xff]  ;;  %vm1492_vm8 = vcmask 1041409   ;;  %vm1522_vm9 = vcmask 15360   ;;  %s1839_s28 = smov 96  }
   0xe   :  { %483 = vmatpush.msra.mxu2 %v321_v1  ;;  %v289_v3 = vld [vmem:[#allocation2 + $0x1f0] sm:$0xff]  ;;  %v287_v7 = vld [vmem:[#allocation2 + $0x1e0] sm:$0xff]  ;;  %v1911_v41 = vshrl.u32 %v68_v32, 7  ;;  %v1936_v1 = vld [vmem:[%s2594_s0 + $0x38] sm:$0xff]  ;;  %s1840_s29 = smov 64   ;;  %s1841_s30 = smov 32  }
   0xf   :  { %v353_v5 = vld [vmem:[#allocation2 + $0x3f0] sm:$0xff]  ;;  %454 = vmatpush.msra.mxu1 %v289_v3  ;;  %426 = vmatpush.msra.mxu0 %v255_v2  ;;  %v351_v9 = vld [vmem:[#allocation2 + $0x3e0] sm:$0xff]  ;;  %s1842_s11 = smov 112   ;;  %vm1592_vm14 = vcmask 261120   ;;  %vm1594_vm15 = vcmask 392192   ;;  %s1843_s1 = smov [#allocation7]  }
  0x10   :  { %512 = vmatpush.msra.mxu3 %v353_v5  ;;  %v253_v6 = vld [vmem:[#allocation2 + $0xd0] sm:$0xff]  ;;  %484 = vmatpush.msra.mxu2 %v319_v4  ;;  %v251_v11 = vld [vmem:[#allocation2 + $0xc0] sm:$0xff]  ;;  %v77_v51 = vand.u32 15, %v1911_v41  ;;  %vm137_vm0 = vcmp.lt.s32.totalorder %v1911_v41, 1  ;;  %vm186_vm3 = vcmp.lt.s32.totalorder %v1911_v41, 7  ;;  %s1646_s3 = sshll.u32 %s1843_s1, 4  ;;  %s1647_s3 = int_to_ptr.vmem [resolvable:$true] %s1646_s3 }
  0x11   :  { %v317_v8 = vld [vmem:[#allocation2 + $0x2d0] sm:$0xff]  ;;  %455 = vmatpush.msra.mxu1 %v287_v7  ;;  %v315_v12 = vld [vmem:[#allocation2 + $0x2c0] sm:$0xff]  ;;  %427 = vmatpush.msra.mxu0 %v253_v6 }
  0x12   :  { %v285_v10 = vld [vmem:[#allocation2 + $0x1d0] sm:$0xff]  ;;  %513 = vmatpush.msra.mxu3 %v351_v9  ;;  %485 = vmatpush.msra.mxu2 %v317_v8  ;;  %v283_v14 = vld [vmem:[#allocation2 + $0x1c0] sm:$0xff]  ;;  %v1926_v63 = vadd.s32 4294967295, %v77_v51  ;;  %v130_v8 = vrot.slane %v1931_v0, 7  ;;  %v136_v9 = vrot.slane %v1936_v1, 7 }
  0x13   :  { %v349_v13 = vld [vmem:[#allocation2 + $0x3d0] sm:$0xff]  ;;  %v347_v15 = vld [vmem:[#allocation2 + $0x3c0] sm:$0xff]  ;;  %456 = vmatpush.msra.mxu1 %v285_v10  ;;  %428 = vmatpush.msra.mxu0 %v251_v11  ;;  %v258_v11 = vld [vmem:[#allocation2 + $0xf8] sm:$0xff] }
  0x14   :  { %514 = vmatpush.msra.mxu3 %v349_v13  ;;  %v249_v16 = vld [vmem:[#allocation2 + $0xb0] sm:$0xff]  ;;  %486 = vmatpush.msra.mxu2 %v315_v12  ;;  %v247_v20 = vld [vmem:[#allocation2 + $0xa0] sm:$0xff]  ;;  %vm150_vm1 = vcmp.ge.s32.totalorder %v1926_v63, 0  ;;  %v990_v63 = vld [vmem:[#allocation5 + $0x508] sm:$0xff] }
  0x15   :  { %v313_v17 = vld [vmem:[#allocation2 + $0x2b0] sm:$0xff]  ;;  %457 = vmatpush.msra.mxu1 %v283_v14  ;;  %v311_v21 = vld [vmem:[#allocation2 + $0x2a0] sm:$0xff]  ;;  %429 = vmatpush.msra.mxu0 %v249_v16 }
  0x16   :  { %v281_v18 = vld [vmem:[#allocation2 + $0x1b0] sm:$0xff]  ;;  %515 = vmatpush.msra.mxu3 %v347_v15  ;;  %487 = vmatpush.msra.mxu2 %v313_v17  ;;  %v279_v22 = vld [vmem:[#allocation2 + $0x1a0] sm:$0xff]  ;;  %v1958_v15 = vsel %vm137_vm0, %v136_v9, %v130_v8  ;;  %v256_v17 = vld [vmem:[#allocation2 + $0xe8] sm:$0xff] }
  0x17   :  { %v345_v19 = vld [vmem:[#allocation2 + $0x3b0] sm:$0xff]  ;;  %v343_v23 = vld [vmem:[#allocation2 + $0x3a0] sm:$0xff]  ;;  %458 = vmatpush.msra.mxu1 %v281_v18  ;;  %430 = vmatpush.msra.mxu0 %v247_v20  ;;  %v290_v18 = vld [vmem:[#allocation2 + $0x1f8] sm:$0xff] }
  0x18   :  { %516 = vmatpush.msra.mxu3 %v345_v19  ;;  %v245_v24 = vld [vmem:[#allocation2 + $0x90] sm:$0xff]  ;;  %488 = vmatpush.msra.mxu2 %v311_v21  ;;  %v243_v28 = vld [vmem:[#allocation2 + $0x80] sm:$0xff]  ;;  %v254_v21 = vld [vmem:[#allocation2 + $0xd8] sm:$0xff] }
  0x19   :  { %v309_v25 = vld [vmem:[#allocation2 + $0x290] sm:$0xff]  ;;  %459 = vmatpush.msra.mxu1 %v279_v22  ;;  %v307_v29 = vld [vmem:[#allocation2 + $0x280] sm:$0xff]  ;;  %431 = vmatpush.msra.mxu0 %v245_v24  ;;  %v288_v22 = vld [vmem:[#allocation2 + $0x1e8] sm:$0xff] }
  0x1a   :  { %v277_v26 = vld [vmem:[#allocation2 + $0x190] sm:$0xff]  ;;  %517 = vmatpush.msra.mxu3 %v343_v23  ;;  %489 = vmatpush.msra.mxu2 %v309_v25  ;;  %v275_v30 = vld [vmem:[#allocation2 + $0x180] sm:$0xff]  ;;  %v1973_v24 = vld [vmem:[%s2594_s0 + $0x18] sm:$0xff] }
  0x1b   :  { %v341_v27 = vld [vmem:[#allocation2 + $0x390] sm:$0xff]  ;;  %v339_v31 = vld [vmem:[#allocation2 + $0x380] sm:$0xff]  ;;  %460 = vmatpush.msra.mxu1 %v277_v26  ;;  %432 = vmatpush.msra.mxu0 %v243_v28  ;;  %v286_v28 = vld [vmem:[#allocation2 + $0x1d8] sm:$0xff]  ;;  %v132_v32 = vrot.slane %v1973_v24, 7 }
  0x1c   :  { %518 = vmatpush.msra.mxu3 %v341_v27  ;;  %v241_v33 = vld [vmem:[#allocation2 + $0x70] sm:$0xff]  ;;  %490 = vmatpush.msra.mxu2 %v307_v29  ;;  %v239_v37 = vld [vmem:[#allocation2 + $0x60] sm:$0xff]  ;;  %v252_v27 = vld [vmem:[#allocation2 + $0xc8] sm:$0xff]  ;;  %v71_v29 = vadd.s32 16, %v1911_v41 }
  0x1d   :  { %v305_v34 = vld [vmem:[#allocation2 + $0x270] sm:$0xff]  ;;  %461 = vmatpush.msra.mxu1 %v275_v30  ;;  %v303_v38 = vld [vmem:[#allocation2 + $0x260] sm:$0xff]  ;;  %433 = vmatpush.msra.mxu0 %v241_v33 }
  0x1e   :  { %v273_v35 = vld [vmem:[#allocation2 + $0x170] sm:$0xff]  ;;  %519 = vmatpush.msra.mxu3 %v339_v31  ;;  %491 = vmatpush.msra.mxu2 %v305_v34  ;;  %v271_v39 = vld [vmem:[#allocation2 + $0x160] sm:$0xff]  ;;  %v250_v34 = vld [vmem:[#allocation2 + $0xb8] sm:$0xff] }
  0x1f   :  { %v337_v36 = vld [vmem:[#allocation2 + $0x370] sm:$0xff]  ;;  %v335_v40 = vld [vmem:[#allocation2 + $0x360] sm:$0xff]  ;;  %462 = vmatpush.msra.mxu1 %v273_v35  ;;  %434 = vmatpush.msra.mxu0 %v239_v37  ;;  %v284_v35 = vld [vmem:[#allocation2 + $0x1c8] sm:$0xff] }
  0x20   :  { %520 = vmatpush.msra.mxu3 %v337_v36  ;;  %v237_v42 = vld [vmem:[#allocation2 + $0x50] sm:$0xff]  ;;  %492 = vmatpush.msra.mxu2 %v303_v38  ;;  %v235_v46 = vld [vmem:[#allocation2 + $0x40] sm:$0xff]  ;;  %v91_v38 = vand.u32 15, %v71_v29  ;;  %v266_v29 = vld [vmem:[#allocation2 + $0x138] sm:$0xff] }
  0x21   :  { %v301_v43 = vld [vmem:[#allocation2 + $0x250] sm:$0xff]  ;;  %463 = vmatpush.msra.mxu1 %v271_v39  ;;  %v299_v47 = vld [vmem:[#allocation2 + $0x240] sm:$0xff]  ;;  %435 = vmatpush.msra.mxu0 %v237_v42  ;;  %v1989_v39 = vsel %vm137_vm0, %v130_v8, %v132_v32  ;;  %v248_v42 = vld [vmem:[#allocation2 + $0xa8] sm:$0xff] }
  0x22   :  { %v269_v44 = vld [vmem:[#allocation2 + $0x150] sm:$0xff]  ;;  %521 = vmatpush.msra.mxu3 %v335_v40  ;;  %493 = vmatpush.msra.mxu2 %v301_v43  ;;  %v267_v49 = vld [vmem:[#allocation2 + $0x140] sm:$0xff]  ;;  %v282_v43 = vld [vmem:[#allocation2 + $0x1b8] sm:$0xff] }
  0x23   :  { %v333_v45 = vld [vmem:[#allocation2 + $0x350] sm:$0xff]  ;;  %v331_v50 = vld [vmem:[#allocation2 + $0x340] sm:$0xff]  ;;  %464 = vmatpush.msra.mxu1 %v269_v44  ;;  %436 = vmatpush.msra.mxu0 %v235_v46  ;;  %v246_v46 = vld [vmem:[#allocation2 + $0x98] sm:$0xff] }
  0x24   :  { %v233_v48 = vld [vmem:[#allocation2 + $0x30] sm:$0xff]  ;;  %522 = vmatpush.msra.mxu3 %v333_v45  ;;  %v1917_v53 = vld [vmem:[%s2594_s0] sm:$0xff]  ;;  %494 = vmatpush.msra.mxu2 %v299_v47  ;;  %v280_v47 = vld [vmem:[#allocation2 + $0x1a8] sm:$0xff] }
  0x25   :  { %v297_v52 = vld [vmem:[#allocation2 + $0x230] sm:$0xff]  ;;  %465 = vmatpush.msra.mxu1 %v267_v49  ;;  %v231_v57 = vld [vmem:[#allocation2 + $0x20] sm:$0xff]  ;;  %437 = vmatpush.msra.mxu0 %v233_v48  ;;  %v129_v61 = vrot.slane %v1917_v53, 7  ;;  %v1999_v49 = vadd.s32 4294967295, %v91_v38  ;;  %v228_v38 = vld [vmem:[#allocation2 + $0x8] sm:$0xff] }
  0x26   :  { %v1922_v54 = vld [vmem:[%s2594_s0 + $0x30] sm:$0xff]  ;;  %523 = vmatpush.msra.mxu3 %v331_v50  ;;  %v295_v58 = vld [vmem:[#allocation2 + $0x220] sm:$0xff]  ;;  %495 = vmatpush.msra.mxu2 %v297_v52  ;;  %v2004_v50 = vld [vmem:[%s2594_s0 + $0x28] sm:$0xff] }
  0x27   :  { %v265_v55 = vld [vmem:[#allocation2 + $0x130] sm:$0xff]  ;;  %v263_v59 = vld [vmem:[#allocation2 + $0x120] sm:$0xff]  ;;  %v135_v62 = vrot.slane %v1922_v54, 7  ;;  %438 = vmatpush.msra.mxu0 %v231_v57  ;;  %vm152_vm2 = vcmp.ge.s32.totalorder %v1999_v49, 0 }
  0x28   :  { %v329_v56 = vld [vmem:[#allocation2 + $0x330] sm:$0xff]  ;;  %v327_v60 = vld [vmem:[#allocation2 + $0x320] sm:$0xff]  ;;  %466 = vmatpush.msra.mxu1 %v265_v55  ;;  %496 = vmatpush.msra.mxu2 %v295_v58  ;;  %v244_v55 = vld [vmem:[#allocation2 + $0x88] sm:$0xff] }
  0x29   :  { %524 = vmatpush.msra.mxu3 %v329_v56  ;;  %v229_v2 = vld [vmem:[#allocation2 + $0x10] sm:$0xff]  ;;  %v227_v6 = vld [vmem:[#allocation2] sm:$0xff]  ;;  %v1947_v10 = vsel %vm137_vm0, %v135_v62, %v129_v61  ;;  %v278_v56 = vld [vmem:[#allocation2 + $0x198] sm:$0xff] }
  0x2a   :  { %v293_v3 = vld [vmem:[#allocation2 + $0x210] sm:$0xff]  ;;  %467 = vmatpush.msra.mxu1 %v263_v59  ;;  %v291_v7 = vld [vmem:[#allocation2 + $0x200] sm:$0xff]  ;;  %439 = vmatpush.msra.mxu0 %v229_v2  ;;  %v134_v59 = vrot.slane %v2004_v50, 7  ;;  %v276_v2 = vld [vmem:[#allocation2 + $0x188] sm:$0xff] }
  0x2b   :  { %v261_v4 = vld [vmem:[#allocation2 + $0x110] sm:$0xff]  ;;  %525 = vmatpush.msra.mxu3 %v327_v60  ;;  %497 = vmatpush.msra.mxu2 %v293_v3  ;;  %v259_v12 = vld [vmem:[#allocation2 + $0x100] sm:$0xff] }
  0x2c   :  { %v325_v5 = vld [vmem:[#allocation2 + $0x310] sm:$0xff]  ;;  %468 = vmatpush.msra.mxu1 %v261_v4  ;;  %440 = vmatpush.msra.mxu0 %v227_v6  ;;  %v323_v13 = vld [vmem:[#allocation2 + $0x300] sm:$0xff]  ;;  %v240_v6 = vld [vmem:[#allocation2 + $0x68] sm:$0xff] }
  0x2d   :  { %526 = vmatpush.msra.mxu3 %v325_v5  ;;  %498 = vmatpush.msra.mxu2 %v291_v7  ;;  %v385_v14 = vld [vmem:[#allocation2 + $0x4f0] sm:$0xff]  ;;  %v383_v19 = vld [vmem:[#allocation2 + $0x4e0] sm:$0xff]  ;;  %v2020_v5 = vsel %vm137_vm0, %v132_v32, %v134_v59  ;;  %v274_v7 = vld [vmem:[#allocation2 + $0x178] sm:$0xff] }
  0x2e   :  { %1662 = vmatmul.msk.f32.vlgmr.msra.gmra.mxu0 %vm150_vm1, %v1947_v10  ;;  %499 = vmatmul.f32.vlgmr.msra.gmra.mxu2 %v1917_v53  ;;  %v1963_v16 = vld [vmem:[%s2594_s0 + $0x10] sm:$0xff]  ;;  %v415_v26 = vld [vmem:[#allocation2 + $0x5e0] sm:$0xff]  ;;  %v230_v32 = vld [vmem:[#allocation2 + $0x18] sm:$0xff] }
  0x2f   :  { %599 = vmatpush.msrb.mxu2 %v258_v11  ;;  %469 = vmatpush.msra.mxu1 %v259_v12  ;;  %v417_v20 = vld [vmem:[#allocation2 + $0x5f0] sm:$0xff]  ;;  %v131_v23 = vrot.slane %v1963_v16, 7  ;;  %v379_v30 = vld [vmem:[#allocation2 + $0x4c0] sm:$0xff]  ;;  %v238_v12 = vld [vmem:[#allocation2 + $0x58] sm:$0xff] }
  0x30   :  { %527 = vmatpush.msra.mxu3 %v323_v13  ;;  %541 = vmatpush.msrb.mxu0 %v385_v14  ;;  %v381_v25 = vld [vmem:[#allocation2 + $0x4d0] sm:$0xff]  ;;  %v411_v37 = vld [vmem:[#allocation2 + $0x5c0] sm:$0xff]  ;;  %v272_v13 = vld [vmem:[#allocation2 + $0x168] sm:$0xff] }
  0x31   :  { %1664 = vmatmul.msk.f32.vlgmr.msra.gmra.mxu1 %vm150_vm1, %v1958_v15  ;;  %528 = vmatmul.f32.vlgmr.msra.gmra.mxu3 %v1931_v0  ;;  %v413_v31 = vld [vmem:[#allocation2 + $0x5d0] sm:$0xff]  ;;  %v1983_v33 = vsel %vm137_vm0, %v129_v61, %v131_v23  ;;  %v1994_v40 = vld [vmem:[%s2594_s0 + $0x20] sm:$0xff]  ;;  %v242_v61 = vld [vmem:[#allocation2 + $0x78] sm:$0xff] }
  0x32   :  { %600 = vmatpush.msrb.mxu2 %v256_v17  ;;  %628 = vmatpush.msrb.mxu3 %v290_v18  ;;  %v377_v36 = vld [vmem:[#allocation2 + $0x4b0] sm:$0xff]  ;;  %v375_v44 = vld [vmem:[#allocation2 + $0x4a0] sm:$0xff]  ;;  %v133_v48 = vrot.slane %v1994_v40, 7  ;;  %v236_v18 = vld [vmem:[#allocation2 + $0x48] sm:$0xff] }
  0x33   :  { %542 = vmatpush.msrb.mxu0 %v383_v19  ;;  %570 = vmatpush.msrb.mxu1 %v417_v20  ;;  %v409_v45 = vld [vmem:[#allocation2 + $0x5b0] sm:$0xff]  ;;  %v407_v52 = vld [vmem:[#allocation2 + $0x5a0] sm:$0xff]  ;;  %v270_v19 = vld [vmem:[#allocation2 + $0x158] sm:$0xff] }
  0x34   :  { %601 = vmatpush.msrb.mxu2 %v254_v21  ;;  %629 = vmatpush.msrb.mxu3 %v288_v22  ;;  %v373_v51 = vld [vmem:[#allocation2 + $0x490] sm:$0xff]  ;;  %v371_v57 = vld [vmem:[#allocation2 + $0x480] sm:$0xff]  ;;  %v2011_v60 = vsel %vm137_vm0, %v131_v23, %v133_v48  ;;  %v2030_v22 = vsel %vm137_vm0, %v133_v48, %v135_v62  ;;  %v234_v23 = vld [vmem:[#allocation2 + $0x38] sm:$0xff] }
  0x35   :  { %543 = vmatpush.msrb.mxu0 %v381_v25  ;;  %571 = vmatpush.msrb.mxu1 %v415_v26  ;;  %v405_v58 = vld [vmem:[#allocation2 + $0x590] sm:$0xff]  ;;  %v403_v4 = vld [vmem:[#allocation2 + $0x580] sm:$0xff]  ;;  %v268_v25 = vld [vmem:[#allocation2 + $0x148] sm:$0xff] }
  0x36   :  { %602 = vmatpush.msrb.mxu2 %v252_v27  ;;  %630 = vmatpush.msrb.mxu3 %v286_v28  ;;  %v369_v3 = vld [vmem:[#allocation2 + $0x470] sm:$0xff]  ;;  %v367_v8 = vld [vmem:[#allocation2 + $0x460] sm:$0xff]  ;;  %v2038_v28 = vsel %vm137_vm0, %v134_v59, %v136_v9  ;;  %v232_v62 = vld [vmem:[#allocation2 + $0x28] sm:$0xff] }
  0x37   :  { %544 = vmatpush.msrb.mxu0 %v379_v30  ;;  %572 = vmatpush.msrb.mxu1 %v413_v31  ;;  %v401_v11 = vld [vmem:[#allocation2 + $0x570] sm:$0xff]  ;;  %v399_v17 = vld [vmem:[#allocation2 + $0x560] sm:$0xff]  ;;  %v384_v59 = vld [vmem:[#allocation2 + $0x4e8] sm:$0xff] }
  0x38   :  { %444 = vmatmul.f32.gmra.mxu0 %v1983_v33  ;;  %502 = vmatmul.f32.gmra.mxu2 %v1963_v16  ;;  %v365_v14 = vld [vmem:[#allocation2 + $0x450] sm:$0xff]  ;;  %v363_v20 = vld [vmem:[#allocation2 + $0x440] sm:$0xff] }
  0x39   :  { %603 = vmatpush.msrb.mxu2 %v250_v34  ;;  %631 = vmatpush.msrb.mxu3 %v284_v35  ;;  %v397_v21 = vld [vmem:[#allocation2 + $0x550] sm:$0xff]  ;;  %v395_v27 = vld [vmem:[#allocation2 + $0x540] sm:$0xff]  ;;  %v264_v34 = vld [vmem:[#allocation2 + $0x128] sm:$0xff]  ;;  %v178_v35 = vrot.slane %v1917_v53, 1 }
  0x3a   :  { %545 = vmatpush.msrb.mxu0 %v377_v36  ;;  %573 = vmatpush.msrb.mxu1 %v411_v37  ;;  %v361_v26 = vld [vmem:[#allocation2 + $0x430] sm:$0xff]  ;;  %v359_v30 = vld [vmem:[#allocation2 + $0x420] sm:$0xff]  ;;  %v180_v36 = vrot.slane %v1963_v16, 1 }
  0x3b   :  { %473 = vmatmul.f32.gmra.mxu1 %v1989_v39  ;;  %531 = vmatmul.f32.gmra.mxu3 %v1973_v24  ;;  %v393_v31 = vld [vmem:[#allocation2 + $0x530] sm:$0xff]  ;;  %v391_v37 = vld [vmem:[#allocation2 + $0x520] sm:$0xff] }
  0x3c   :  { %604 = vmatpush.msrb.mxu2 %v248_v42  ;;  %632 = vmatpush.msrb.mxu3 %v282_v43  ;;  %v357_v9 = vld [vmem:[#allocation2 + $0x410] sm:$0xff]  ;;  %v262_v42 = vld [vmem:[#allocation2 + $0x118] sm:$0xff]  ;;  %v70_v43 = vadd.s32 8, %v1911_v41  ;;  %v2052_v48 = vsel %vm186_vm3, %v178_v35, %v180_v36 }
  0x3d   :  { %546 = vmatpush.msrb.mxu0 %v375_v44  ;;  %574 = vmatpush.msrb.mxu1 %v409_v45  ;;  %v355_v44 = vld [vmem:[#allocation2 + $0x400] sm:$0xff]  ;;  %v389_v45 = vld [vmem:[#allocation2 + $0x510] sm:$0xff] }
  0x3e   :  { %605 = vmatpush.msrb.mxu2 %v246_v46  ;;  %633 = vmatpush.msrb.mxu3 %v280_v47  ;;  %v179_v46 = vrot.slane %v1931_v0, 1  ;;  %v181_v47 = vrot.slane %v1973_v24, 1 }
  0x3f   :  { %547 = vmatpush.msrb.mxu0 %v373_v51  ;;  %575 = vmatpush.msrb.mxu1 %v407_v52  ;;  %v260_v51 = vld [vmem:[#allocation2 + $0x108] sm:$0xff]  ;;  %v386_v52 = vld [vmem:[#allocation2 + $0x4f8] sm:$0xff] }
  0x40   :  { %606 = vmatpush.msrb.mxu2 %v244_v55  ;;  %634 = vmatpush.msrb.mxu3 %v278_v56  ;;  %v387_v55 = vld [vmem:[#allocation2 + $0x500] sm:$0xff]  ;;  %v322_v56 = vld [vmem:[#allocation2 + $0x2f8] sm:$0xff] }
  0x41   :  { %548 = vmatpush.msrb.mxu0 %v371_v57  ;;  %576 = vmatpush.msrb.mxu1 %v405_v58  ;;  %v84_v57 = vand.u32 15, %v70_v43  ;;  %v2062_v58 = vsel %vm186_vm3, %v179_v46, %v181_v47 }
  0x42   :  { %1663 = vmatmul.msk.f32.gmra.mxu0 %vm152_vm2, %v2011_v60  ;;  %505 = vmatmul.f32.gmra.mxu2 %v1994_v40 }
  0x43   :  { %607 = vmatpush.msrb.mxu2 %v242_v61  ;;  %635 = vmatpush.msrb.mxu3 %v276_v2  ;;  %v418_v61 = vld [vmem:[#allocation2 + $0x5f8] sm:$0xff]  ;;  %v320_v2 = vld [vmem:[#allocation2 + $0x2e8] sm:$0xff] }
  0x44   :  { %549 = vmatpush.msrb.mxu0 %v369_v3  ;;  %577 = vmatpush.msrb.mxu1 %v403_v4  ;;  %v354_v3 = vld [vmem:[#allocation2 + $0x3f8] sm:$0xff]  ;;  %v416_v4 = vld [vmem:[#allocation2 + $0x5e8] sm:$0xff] }
  0x45   :  { %1665 = vmatmul.msk.f32.gmra.mxu1 %vm152_vm2, %v2020_v5  ;;  %534 = vmatmul.f32.gmra.mxu3 %v2004_v50 }
  0x46   :  { %608 = vmatpush.msrb.mxu2 %v240_v6  ;;  %636 = vmatpush.msrb.mxu3 %v274_v7  ;;  %v182_v6 = vrot.slane %v1994_v40, 1  ;;  %v2069_v7 = vadd.s32 1, %v84_v57  ;;  %v402_v57 = vld [vmem:[#allocation2 + $0x578] sm:$0xff] }
  0x47   :  { %550 = vmatpush.msrb.mxu0 %v367_v8  ;;  %578 = vmatpush.msrb.mxu1 %v401_v11  ;;  %v318_v8 = vld [vmem:[#allocation2 + $0x2d8] sm:$0xff]  ;;  %v352_v11 = vld [vmem:[#allocation2 + $0x3e8] sm:$0xff] }
  0x48   :  { %609 = vmatpush.msrb.mxu2 %v238_v12  ;;  %637 = vmatpush.msrb.mxu3 %v272_v13  ;;  %v380_v12 = vld [vmem:[#allocation2 + $0x4c8] sm:$0xff]  ;;  %v414_v13 = vld [vmem:[#allocation2 + $0x5d8] sm:$0xff]  ;;  %vm204_vm4 = vcmp.lt.s32.totalorder %v2069_v7, 16 }
  0x49   :  { %551 = vmatpush.msrb.mxu0 %v365_v14  ;;  %579 = vmatpush.msrb.mxu1 %v399_v17  ;;  %v316_v14 = vld [vmem:[#allocation2 + $0x2c8] sm:$0xff]  ;;  %v350_v17 = vld [vmem:[#allocation2 + $0x3d8] sm:$0xff] }
  0x4a   :  { %610 = vmatpush.msrb.mxu2 %v236_v18  ;;  %638 = vmatpush.msrb.mxu3 %v270_v19  ;;  %v2074_v18 = vsel %vm186_vm3, %v180_v36, %v182_v6  ;;  %v378_v19 = vld [vmem:[#allocation2 + $0x4b8] sm:$0xff]  ;;  %v372_v36 = vld [vmem:[#allocation2 + $0x488] sm:$0xff] }
  0x4b   :  { %552 = vmatpush.msrb.mxu0 %v363_v20  ;;  %580 = vmatpush.msrb.mxu1 %v397_v21  ;;  %v412_v20 = vld [vmem:[#allocation2 + $0x5c8] sm:$0xff]  ;;  %v314_v21 = vld [vmem:[#allocation2 + $0x2b8] sm:$0xff] }
  0x4c   :  { %450 = vmatmul.f32.gmra.mxu0 %v2030_v22  ;;  %508 = vmatmul.f32.gmra.mxu2 %v1922_v54  ;;  %v1390_v7 = vld [vmem:[%s2599_s5 + $0x78] sm:$0xff] }
  0x4d   :  { %611 = vmatpush.msrb.mxu2 %v234_v23  ;;  %639 = vmatpush.msrb.mxu3 %v268_v25  ;;  %v348_v23 = vld [vmem:[#allocation2 + $0x3c8] sm:$0xff] }
  0x4e   :  { %553 = vmatpush.msrb.mxu0 %v361_v26  ;;  %581 = vmatpush.msrb.mxu1 %v395_v27  ;;  %v376_v26 = vld [vmem:[#allocation2 + $0x4a8] sm:$0xff]  ;;  %v410_v27 = vld [vmem:[#allocation2 + $0x5b8] sm:$0xff] }
  0x4f   :  { %479 = vmatmul.f32.gmra.mxu1 %v2038_v28  ;;  %537 = vmatmul.f32.gmra.mxu3 %v1936_v1 }
  0x50   :  { %612 = vmatpush.msrb.mxu2 %v232_v62  ;;  %640 = vmatpush.msrb.mxu3 %v266_v29  ;;  %v312_v62 = vld [vmem:[#allocation2 + $0x2a8] sm:$0xff]  ;;  %v346_v29 = vld [vmem:[#allocation2 + $0x3b8] sm:$0xff] }
  0x51   :  { %554 = vmatpush.msrb.mxu0 %v359_v30  ;;  %582 = vmatpush.msrb.mxu1 %v393_v31  ;;  %v374_v30 = vld [vmem:[#allocation2 + $0x498] sm:$0xff]  ;;  %v184_v31 = vrot.slane %v1922_v54, 1 }
  0x52   :  { %613 = vmatpush.msrb.mxu2 %v230_v32  ;;  %641 = vmatpush.msrb.mxu3 %v264_v34  ;;  %v310_v32 = vld [vmem:[#allocation2 + $0x298] sm:$0xff]  ;;  %v344_v34 = vld [vmem:[#allocation2 + $0x3a8] sm:$0xff] }
  0x53   :  { %555 = vmatpush.msrb.mxu0 %v357_v9  ;;  %583 = vmatpush.msrb.mxu1 %v391_v37  ;;  %v406_v9 = vld [vmem:[#allocation2 + $0x598] sm:$0xff]  ;;  %v72_v37 = vadd.s32 24, %v1911_v41  ;;  %v2094_v43 = vsel %vm186_vm3, %v182_v6, %v184_v31  ;;  %v364_v6 = vld [vmem:[#allocation2 + $0x448] sm:$0xff]  ;;  %v1389_v41 = vld [vmem:[%s2599_s5 + $0x70] sm:$0xff] }
  0x54   :  { %614 = vmatpush.msrb.mxu2 %v228_v38  ;;  %642 = vmatpush.msrb.mxu3 %v262_v42  ;;  %v308_v38 = vld [vmem:[#allocation2 + $0x288] sm:$0xff]  ;;  %v342_v42 = vld [vmem:[#allocation2 + $0x398] sm:$0xff] }
  0x55   :  { %556 = vmatpush.msrb.mxu0 %v355_v44  ;;  %584 = vmatpush.msrb.mxu1 %v389_v45  ;;  %v370_v44 = vld [vmem:[#allocation2 + $0x478] sm:$0xff]  ;;  %v404_v45 = vld [vmem:[#allocation2 + $0x588] sm:$0xff] }
  0x56   :  { %557 = vmatmul.f32.vlgmr.msrb.gmra.mxu0 %v2052_v48  ;;  %1670 = vmatmul.msk.f32.vlgmr.msrb.gmra.mxu2 %vm150_vm1, %v1947_v10  ;;  %v382_v10 = vld [vmem:[#allocation2 + $0x4d8] sm:$0xff] }
  0x57   :  { %643 = vmatpush.msrb.mxu3 %v260_v51  ;;  %715 = vmatpush.msra.mxu2 %v386_v52  ;;  %v340_v51 = vld [vmem:[#allocation2 + $0x388] sm:$0xff]  ;;  %v98_v52 = vand.u32 15, %v72_v37  ;;  %v899_v37 = vld [vmem:[#allocation5 + $0x230] sm:$0xff] }
  0x58   :  { %585 = vmatpush.msrb.mxu1 %v387_v55  ;;  %657 = vmatpush.msra.mxu0 %v322_v56  ;;  %v368_v56 = vld [vmem:[#allocation2 + $0x468] sm:$0xff] }
  0x59   :  { %586 = vmatmul.f32.vlgmr.msrb.gmra.mxu1 %v2062_v58  ;;  %1672 = vmatmul.msk.f32.vlgmr.msrb.gmra.mxu3 %vm150_vm1, %v1958_v15  ;;  %v183_v15 = vrot.slane %v2004_v50, 1 }
  0x5a   :  { %716 = vmatpush.msra.mxu2 %v384_v59  ;;  %744 = vmatpush.msra.mxu3 %v418_v61  ;;  %v304_v59 = vld [vmem:[#allocation2 + $0x268] sm:$0xff]  ;;  %v338_v61 = vld [vmem:[#allocation2 + $0x378] sm:$0xff] }
  0x5b   :  { %658 = vmatpush.msra.mxu0 %v320_v2  ;;  %686 = vmatpush.msra.mxu1 %v354_v3  ;;  %v2083_v25 = vsel %vm186_vm3, %v181_v47, %v183_v15  ;;  %v306_v47 = vld [vmem:[#allocation2 + $0x278] sm:$0xff]  ;;  %v2108_v3 = vadd.s32 1, %v98_v52  ;;  %v855_v52 = vld [vmem:[#allocation5 + $0xd0] sm:$0xff] }
  0x5c   :  { %717 = vmatpush.msra.mxu2 %v382_v10  ;;  %745 = vmatpush.msra.mxu3 %v416_v4  ;;  %v366_v2 = vld [vmem:[#allocation2 + $0x458] sm:$0xff]  ;;  %v336_v4 = vld [vmem:[#allocation2 + $0x368] sm:$0xff] }
  0x5d   :  { %659 = vmatpush.msra.mxu0 %v318_v8  ;;  %687 = vmatpush.msra.mxu1 %v352_v11  ;;  %v302_v10 = vld [vmem:[#allocation2 + $0x258] sm:$0xff]  ;;  %v300_v11 = vld [vmem:[#allocation2 + $0x248] sm:$0xff]  ;;  %vm206_vm5 = vcmp.lt.s32.totalorder %v2108_v3, 16 }
  0x5e   :  { %718 = vmatpush.msra.mxu2 %v380_v12  ;;  %746 = vmatpush.msra.mxu3 %v414_v13  ;;  %v398_v8 = vld [vmem:[#allocation2 + $0x558] sm:$0xff] }
  0x5f   :  { %660 = vmatpush.msra.mxu0 %v316_v14  ;;  %688 = vmatpush.msra.mxu1 %v350_v17  ;;  %v334_v12 = vld [vmem:[#allocation2 + $0x358] sm:$0xff]  ;;  %v396_v14 = vld [vmem:[#allocation2 + $0x548] sm:$0xff] }
  0x60   :  { %1666 = vmatmul.msk.f32.gmra.mxu0 %vm204_vm4, %v2074_v18  ;;  %618 = vmatmul.f32.gmra.mxu2 %v1983_v33  ;;  %v408_v33 = vld [vmem:[#allocation2 + $0x5a8] sm:$0xff]  ;;  %v362_v13 = vld [vmem:[#allocation2 + $0x438] sm:$0xff] }
  0x61   :  { %719 = vmatpush.msra.mxu2 %v378_v19  ;;  %747 = vmatpush.msra.mxu3 %v412_v20  ;;  %v298_v17 = vld [vmem:[#allocation2 + $0x238] sm:$0xff]  ;;  %v360_v19 = vld [vmem:[#allocation2 + $0x428] sm:$0xff] }
  0x62   :  { %661 = vmatpush.msra.mxu0 %v314_v21  ;;  %689 = vmatpush.msra.mxu1 %v348_v23  ;;  %v394_v20 = vld [vmem:[#allocation2 + $0x538] sm:$0xff]  ;;  %v296_v21 = vld [vmem:[#allocation2 + $0x228] sm:$0xff] }
  0x63   :  { %1668 = vmatmul.msk.f32.gmra.mxu1 %vm204_vm4, %v2083_v25  ;;  %647 = vmatmul.f32.gmra.mxu3 %v1989_v39  ;;  %v185_v39 = vrot.slane %v1936_v1, 1  ;;  %v330_v23 = vld [vmem:[#allocation2 + $0x338] sm:$0xff] }
  0x64   :  { %720 = vmatpush.msra.mxu2 %v376_v26  ;;  %748 = vmatpush.msra.mxu3 %v410_v27  ;;  %v358_v26 = vld [vmem:[#allocation2 + $0x418] sm:$0xff] }
  0x65   :  { %662 = vmatpush.msra.mxu0 %v312_v62  ;;  %690 = vmatpush.msra.mxu1 %v346_v29  ;;  %v2102_v55 = vsel %vm186_vm3, %v183_v15, %v185_v39  ;;  %v332_v15 = vld [vmem:[#allocation2 + $0x348] sm:$0xff]  ;;  %v294_v27 = vld [vmem:[#allocation2 + $0x218] sm:$0xff] }
  0x66   :  { %721 = vmatpush.msra.mxu2 %v374_v30  ;;  %749 = vmatpush.msra.mxu3 %v408_v33  ;;  %v328_v62 = vld [vmem:[#allocation2 + $0x328] sm:$0xff]  ;;  %v390_v29 = vld [vmem:[#allocation2 + $0x518] sm:$0xff] }
  0x67   :  { %663 = vmatpush.msra.mxu0 %v310_v32  ;;  %691 = vmatpush.msra.mxu1 %v344_v34  ;;  %v292_v30 = vld [vmem:[#allocation2 + $0x208] sm:$0xff]  ;;  %v326_v33 = vld [vmem:[#allocation2 + $0x318] sm:$0xff]  ;;  %v901_v34 = vld [vmem:[#allocation5 + $0x240] sm:$0xff] }
  0x68   :  { %722 = vmatpush.msra.mxu2 %v372_v36  ;;  %750 = vmatpush.msra.mxu3 %v406_v9 }
  0x69   :  { %664 = vmatpush.msra.mxu0 %v308_v38  ;;  %692 = vmatpush.msra.mxu1 %v342_v42 }
  0x6a   :  { %563 = vmatmul.f32.gmra.mxu0 %v2094_v43  ;;  %1671 = vmatmul.msk.f32.gmra.mxu2 %vm152_vm2, %v2011_v60  ;;  %v400_v60 = vld [vmem:[#allocation2 + $0x568] sm:$0xff] }
  0x6b   :  { %723 = vmatpush.msra.mxu2 %v370_v44  ;;  %751 = vmatpush.msra.mxu3 %v404_v45  ;;  %v859_v44 = vld [vmem:[#allocation5 + $0xf0] sm:$0xff] }
  0x6c   :  { %665 = vmatpush.msra.mxu0 %v306_v47  ;;  %693 = vmatpush.msra.mxu1 %v340_v51  ;;  %v895_v45 = vld [vmem:[#allocation5 + $0x210] sm:$0xff]  ;;  %v857_v47 = vld [vmem:[#allocation5 + $0xe0] sm:$0xff] }
  0x6d   :  { %592 = vmatmul.f32.gmra.mxu1 %v2102_v55  ;;  %1673 = vmatmul.msk.f32.gmra.mxu3 %vm152_vm2, %v2020_v5  ;;  %v193_v5 = vsel %vm186_vm3, %v184_v31, %v178_v35  ;;  %v194_v35 = vsel %vm186_vm3, %v185_v39, %v179_v46  ;;  %v356_v46 = vld [vmem:[#allocation2 + $0x408] sm:$0xff]  ;;  %v893_v51 = vld [vmem:[#allocation5 + $0x200] sm:$0xff] }
  0x6e   :  { %724 = vmatpush.msra.mxu2 %v368_v56  ;;  %752 = vmatpush.msra.mxu3 %v402_v57  ;;  %v388_v31 = vld [vmem:[#allocation2 + $0x508] sm:$0xff]  ;;  %v860_v56 = vld [vmem:[#allocation5 + $0xf8] sm:$0xff]  ;;  %v2160_v57 = vld [vmem:[%s2596_s2] sm:$0x3] }
  0x6f   :  { %666 = vmatpush.msra.mxu0 %v304_v59  ;;  %694 = vmatpush.msra.mxu1 %v338_v61  ;;  %v853_v61 = vld [vmem:[#allocation5 + $0xc0] sm:$0xff] }
  0x70   :  { %725 = vmatpush.msra.mxu2 %v366_v2  ;;  %753 = vmatpush.msra.mxu3 %v400_v60  ;;  %v2165_v2 = vperm.slane %v2160_v57, 0 }
  0x71   :  { %667 = vmatpush.msra.mxu0 %v302_v10  ;;  %695 = vmatpush.msra.mxu1 %v336_v4  ;;  %v858_v10 = vld [vmem:[#allocation5 + $0xe8] sm:$0xff]  ;;  %v851_v4 = vld [vmem:[#allocation5 + $0xb0] sm:$0xff] }
  0x72   :  { %726 = vmatpush.msra.mxu2 %v364_v6  ;;  %754 = vmatpush.msra.mxu3 %v398_v8  ;;  %v856_v6 = vld [vmem:[#allocation5 + $0xd8] sm:$0xff]  ;;  %v849_v8 = vld [vmem:[#allocation5 + $0xa0] sm:$0xff] }
  0x73   :  { %668 = vmatpush.msra.mxu0 %v300_v11  ;;  %696 = vmatpush.msra.mxu1 %v334_v12  ;;  %v955_v11 = vld [vmem:[#allocation5 + $0x3f0] sm:$0xff] }
  0x74   :  { %1667 = vmatmul.msk.f32.gmra.mxu0 %vm206_vm5, %v193_v5  ;;  %624 = vmatmul.f32.gmra.mxu2 %v2030_v22  ;;  %v392_v22 = vld [vmem:[#allocation2 + $0x528] sm:$0xff] }
  0x75   :  { %727 = vmatpush.msra.mxu2 %v362_v13  ;;  %755 = vmatpush.msra.mxu3 %v396_v14  ;;  %v847_v13 = vld [vmem:[#allocation5 + $0x90] sm:$0xff] }
  0x76   :  { %669 = vmatpush.msra.mxu0 %v298_v17  ;;  %697 = vmatpush.msra.mxu1 %v332_v15  ;;  %v953_v15 = vld [vmem:[#allocation5 + $0x3e0] sm:$0xff] }
  0x77   :  { %1669 = vmatmul.msk.f32.gmra.mxu1 %vm206_vm5, %v194_v35  ;;  %653 = vmatmul.f32.gmra.mxu3 %v2038_v28  ;;  %v324_v28 = vld [vmem:[#allocation2 + $0x308] sm:$0xff] }
  0x78   :  { %728 = vmatpush.msra.mxu2 %v360_v19  ;;  %756 = vmatpush.msra.mxu3 %v394_v20  ;;  %v845_v19 = vld [vmem:[#allocation5 + $0x80] sm:$0xff] }
  0x79   :  { %670 = vmatpush.msra.mxu0 %v296_v21  ;;  %698 = vmatpush.msra.mxu1 %v330_v23 }
  0x7a   :  { %729 = vmatpush.msra.mxu2 %v358_v26  ;;  %757 = vmatpush.msra.mxu3 %v392_v22  ;;  %v951_v26 = vld [vmem:[#allocation5 + $0x3d0] sm:$0xff]  ;;  %v850_v22 = vld [vmem:[#allocation5 + $0xa8] sm:$0xff] }
  0x7b   :  { %671 = vmatpush.msra.mxu0 %v294_v27  ;;  %699 = vmatpush.msra.mxu1 %v328_v62  ;;  %v843_v27 = vld [vmem:[#allocation5 + $0x70] sm:$0xff]  ;;  %v949_v62 = vld [vmem:[#allocation5 + $0x3c0] sm:$0xff] }
  0x7c   :  { %730 = vmatpush.msra.mxu2 %v356_v46  ;;  %758 = vmatpush.msra.mxu3 %v390_v29  ;;  %v848_v46 = vld [vmem:[#allocation5 + $0x98] sm:$0xff] }
  0x7d   :  { %672 = vmatpush.msra.mxu0 %v292_v30  ;;  %700 = vmatpush.msra.mxu1 %v326_v33  ;;  %v841_v30 = vld [vmem:[#allocation5 + $0x60] sm:$0xff]  ;;  %v947_v33 = vld [vmem:[#allocation5 + $0x3b0] sm:$0xff] }
  0x7e   :  { %673 = vmatmul.f32.vlgmr.msra.gmra.mxu0 %v1917_v53  ;;  %731 = vmatmul.f32.vlgmr.msra.gmra.mxu2 %v2052_v48  ;;  %v923_v53 = vld [vmem:[#allocation5 + $0x2f0] sm:$0xff]  ;;  %v909_v48 = vld [vmem:[#allocation5 + $0x280] sm:$0xff] }
  0x7f   :  { %759 = vmatpush.msra.mxu3 %v388_v31  ;;  %701 = vmatpush.msra.mxu1 %v324_v28  ;;  %v846_v31 = vld [vmem:[#allocation5 + $0x88] sm:$0xff] }
  0x80   :  { %702 = vmatmul.f32.vlgmr.msra.gmra.mxu1 %v1931_v0  ;;  %760 = vmatmul.f32.vlgmr.msra.gmra.mxu3 %v2062_v58  ;;  %v921_v0 = vld [vmem:[#allocation5 + $0x2e0] sm:$0xff]  ;;  %v907_v58 = vld [vmem:[#allocation5 + $0x270] sm:$0xff] }
  0x81   :  { %1085 = vmatpush.msrb.mxu2 %v923_v53  ;;  %1027 = vmatpush.msrb.mxu0 %v859_v44  ;;  %v839_v53 = vld [vmem:[#allocation5 + $0x50] sm:$0xff] }
  0x82   :  { %1114 = vmatpush.msrb.mxu3 %v955_v11  ;;  %v939_v44 = vld [vmem:[#allocation5 + $0x370] sm:$0xff] }
  0x83   :  { %1086 = vmatpush.msrb.mxu2 %v921_v0  ;;  %1028 = vmatpush.msrb.mxu0 %v857_v47 }
  0x84   :  { %1115 = vmatpush.msrb.mxu3 %v953_v15  ;;  %v832_v15 = vld [vmem:[#allocation5 + $0x18] sm:$0xff] }
  0x85   :  { %1029 = vmatpush.msrb.mxu0 %v855_v52 }
  0x86   :  { %676 = vmatmul.f32.gmra.mxu0 %v1963_v16  ;;  %1674 = vmatmul.msk.f32.gmra.mxu2 %vm204_vm4, %v2074_v18  ;;  %v919_v16 = vld [vmem:[#allocation5 + $0x2d0] sm:$0xff] }
  0x87   :  { %1087 = vmatpush.msrb.mxu2 %v919_v16  ;;  %1030 = vmatpush.msrb.mxu0 %v853_v61  ;;  %v836_v61 = vld [vmem:[#allocation5 + $0x38] sm:$0xff] }
  0x88   :  { %705 = vmatmul.f32.gmra.mxu1 %v1973_v24  ;;  %1676 = vmatmul.msk.f32.gmra.mxu3 %vm204_vm4, %v2083_v25  ;;  %v917_v24 = vld [vmem:[#allocation5 + $0x2c0] sm:$0xff]  ;;  %v903_v25 = vld [vmem:[#allocation5 + $0x250] sm:$0xff] }
  0x89   :  { %1088 = vmatpush.msrb.mxu2 %v917_v24  ;;  %1031 = vmatpush.msrb.mxu0 %v851_v4 }
  0x8a   :  { %1116 = vmatpush.msrb.mxu3 %v951_v26 }
  0x8b   :  { %1032 = vmatpush.msrb.mxu0 %v849_v8  ;;  %v834_v8 = vld [vmem:[#allocation5 + $0x28] sm:$0xff] }
  0x8c   :  { %1117 = vmatpush.msrb.mxu3 %v949_v62  ;;  %v988_v62 = vld [vmem:[#allocation5 + $0x4f8] sm:$0xff] }
  0x8d   :  { %1033 = vmatpush.msrb.mxu0 %v847_v13 }
  0x8e   :  { %679 = vmatmul.f32.gmra.mxu0 %v1994_v40  ;;  %737 = vmatmul.f32.gmra.mxu2 %v2094_v43  ;;  %v915_v40 = vld [vmem:[#allocation5 + $0x2b0] sm:$0xff]  ;;  %v897_v43 = vld [vmem:[#allocation5 + $0x220] sm:$0xff] }
  0x8f   :  { %1089 = vmatpush.msrb.mxu2 %v915_v40  ;;  %1034 = vmatpush.msrb.mxu0 %v845_v19  ;;  %v945_v40 = vld [vmem:[#allocation5 + $0x3a0] sm:$0xff] }
  0x90   :  { %708 = vmatmul.f32.gmra.mxu1 %v2004_v50  ;;  %766 = vmatmul.f32.gmra.mxu3 %v2102_v55  ;;  %v913_v50 = vld [vmem:[#allocation5 + $0x2a0] sm:$0xff] }
  0x91   :  { %1090 = vmatpush.msrb.mxu2 %v913_v50  ;;  %1035 = vmatpush.msrb.mxu0 %v843_v27  ;;  %v844_v50 = vld [vmem:[#allocation5 + $0x78] sm:$0xff] }
  0x92   :  { %1118 = vmatpush.msrb.mxu3 %v947_v33  ;;  %v981_v33 = vld [vmem:[#allocation5 + $0x4c0] sm:$0xff] }
  0x93   :  { %1036 = vmatpush.msrb.mxu0 %v841_v30  ;;  %v891_v30 = vld [vmem:[#allocation5 + $0x1f0] sm:$0xff] }
  0x94   :  { %1119 = vmatpush.msrb.mxu3 %v945_v40  ;;  %1056 = vmatpush.msrb.mxu1 %v891_v30 }
  0x95   :  { %1037 = vmatpush.msrb.mxu0 %v839_v53  ;;  %v927_v53 = vld [vmem:[#allocation5 + $0x310] sm:$0xff] }
  0x96   :  { %682 = vmatmul.f32.gmra.mxu0 %v1922_v54  ;;  %1675 = vmatmul.msk.f32.gmra.mxu2 %vm206_vm5, %v193_v5  ;;  %v911_v54 = vld [vmem:[#allocation5 + $0x290] sm:$0xff]  ;;  %v854_v5 = vld [vmem:[#allocation5 + $0xc8] sm:$0xff] }
  0x97   :  { %1091 = vmatpush.msrb.mxu2 %v911_v54  ;;  %v837_v54 = vld [vmem:[#allocation5 + $0x40] sm:$0xff] }
  0x98   :  { %711 = vmatmul.f32.gmra.mxu1 %v1936_v1  ;;  %1677 = vmatmul.msk.f32.gmra.mxu3 %vm206_vm5, %v194_v35  ;;  %v905_v1 = vld [vmem:[#allocation5 + $0x260] sm:$0xff]  ;;  %v852_v35 = vld [vmem:[#allocation5 + $0xb8] sm:$0xff] }
  0x99   :  { %1092 = vmatpush.msrb.mxu2 %v909_v48  ;;  %1038 = vmatpush.msrb.mxu0 %v837_v54  ;;  %v925_v54 = vld [vmem:[#allocation5 + $0x300] sm:$0xff] }
  0x9b   :  { %1093 = vmatpush.msrb.mxu2 %v907_v58 }
  0x9d   :  { %1094 = vmatpush.msrb.mxu2 %v905_v1  ;;  %v943_v1 = vld [vmem:[#allocation5 + $0x390] sm:$0xff] }
  0x9e   :  { %1120 = vmatpush.msrb.mxu3 %v943_v1 }
  0x9f   :  { %1095 = vmatpush.msrb.mxu2 %v903_v25  ;;  %v842_v25 = vld [vmem:[#allocation5 + $0x68] sm:$0xff] }
  0xa1   :  { %1096 = vmatpush.msrb.mxu2 %v901_v34 }
  0xa3   :  { %1097 = vmatpush.msrb.mxu2 %v899_v37 }
  0xa5   :  { %1098 = vmatpush.msrb.mxu2 %v897_v43 }
  0xa7   :  { %1099 = vmatpush.msrb.mxu2 %v895_v45 }
  0xa9   :  { %1100 = vmatpush.msrb.mxu2 %v893_v51  ;;  %v831_v51 = vld [vmem:[#allocation5 + $0x10] sm:$0xff] }
  0xab   :  { %v442_v18 = vpop.f32.mrf.mxu0  ;;  %1201 = vmatpush.msra.mxu2 %v860_v56  ;;  %v937_v56 = vld [vmem:[#allocation5 + $0x360] sm:$0xff] }
  0xac   :  { %v443_v14 = vadd.f32 %v442_v18, %v2165_v2 }
  0xad   :  { %1202 = vmatpush.msra.mxu2 %v858_v10 }
  0xae   :  { %v471_v32 = vpop.f32.mrf.mxu1 }
  0xaf   :  { %1203 = vmatpush.msra.mxu2 %v856_v6  ;;  %v472_v21 = vadd.f32 %v471_v32, %v443_v14  ;;  %v835_v32 = vld [vmem:[#allocation5 + $0x30] sm:$0xff]  ;;  %v933_v14 = vld [vmem:[#allocation5 + $0x340] sm:$0xff] }
  0xb0   :  { %1039 = vmatpush.msrb.mxu0 %v835_v32  ;;  %v935_v6 = vld [vmem:[#allocation5 + $0x350] sm:$0xff]  ;;  %v982_v32 = vld [vmem:[#allocation5 + $0x4c8] sm:$0xff] }
  0xb1   :  { %v500_v36 = vpop.f32.mrf.mxu2  ;;  %1204 = vmatpush.msra.mxu2 %v854_v5  ;;  %v987_v5 = vld [vmem:[#allocation5 + $0x4f0] sm:$0xff] }
  0xb2   :  { %v501_v29 = vadd.f32 %v500_v36, %v472_v21  ;;  %v941_v36 = vld [vmem:[#allocation5 + $0x380] sm:$0xff]  ;;  %v830_v21 = vld [vmem:[#allocation5 + $0x8] sm:$0xff] }
  0xb3   :  { %1205 = vmatpush.msra.mxu2 %v852_v35  ;;  %1121 = vmatpush.msrb.mxu3 %v941_v36  ;;  %v985_v35 = vld [vmem:[#allocation5 + $0x4e0] sm:$0xff] }
  0xb4   :  { %v2147_v9 = vpop.f32.mrf.mxu3 }
  0xb5   :  { %v2149_v38 = vpop.f32.mrf.mxu0  ;;  %1206 = vmatpush.msra.mxu2 %v850_v22  ;;  %v530_v16 = vadd.f32 %v2147_v9, %v501_v29  ;;  %v840_v9 = vld [vmem:[#allocation5 + $0x58] sm:$0xff]  ;;  %1122 = vmatpush.msrb.mxu3 %v939_v44  ;;  %v983_v22 = vld [vmem:[#allocation5 + $0x4d0] sm:$0xff]  ;;  %v973_v44 = vld [vmem:[#allocation5 + $0x480] sm:$0xff] }
  0xb6   :  { %v446_v0 = vadd.f32 %v2149_v38, %v2165_v2  ;;  %v833_v38 = vld [vmem:[#allocation5 + $0x20] sm:$0xff] }
  0xb7   :  { %1207 = vmatpush.msra.mxu2 %v848_v46  ;;  %1040 = vmatpush.msrb.mxu0 %v833_v38 }
  0xb8   :  { %v2151_v42 = vpop.f32.mrf.mxu1  ;;  %1123 = vmatpush.msrb.mxu3 %v937_v56 }
  0xb9   :  { %1208 = vmatpush.msra.mxu2 %v846_v31  ;;  %v475_v58 = vadd.f32 %v2151_v42, %v446_v0  ;;  %v838_v42 = vld [vmem:[#allocation5 + $0x48] sm:$0xff]  ;;  %1041 = vmatpush.msrb.mxu0 %v831_v51 }
  0xba   :  { %1124 = vmatpush.msrb.mxu3 %v935_v6  ;;  %v986_v0 = vld [vmem:[#allocation5 + $0x4e8] sm:$0xff] }
  0xbb   :  { %v2153_v39 = vpop.f32.mrf.mxu2  ;;  %1209 = vmatpush.msra.mxu2 %v844_v50  ;;  %v978_v51 = vld [vmem:[#allocation5 + $0x4a8] sm:$0xff] }
  0xbc   :  { %v504_v43 = vadd.f32 %v2153_v39, %v475_v58  ;;  %v829_v39 = vld [vmem:[#allocation5] sm:$0xff]  ;;  %1125 = vmatpush.msrb.mxu3 %v933_v14  ;;  %v886_v6 = vld [vmem:[#allocation5 + $0x1c8] sm:$0xff] }
  0xbd   :  { %1210 = vmatpush.msra.mxu2 %v842_v25  ;;  %1042 = vmatpush.msrb.mxu0 %v829_v39  ;;  %v892_v25 = vld [vmem:[#allocation5 + $0x1f8] sm:$0xff]  ;;  %v971_v39 = vld [vmem:[#allocation5 + $0x470] sm:$0xff] }
  0xbe   :  { %v2155_v55 = vpop.f32.mrf.mxu3 }
  0xbf   :  { %v2162_v59 = vpop.f32.mrf.mxu0  ;;  %1211 = vmatpush.msra.mxu2 %v840_v9  ;;  %v533_v10 = vadd.f32 %v2155_v55, %v504_v43  ;;  %1143 = vmatpush.msra.mxu0 %v987_v5  ;;  %v931_v55 = vld [vmem:[#allocation5 + $0x330] sm:$0xff]  ;;  %v890_v9 = vld [vmem:[#allocation5 + $0x1e8] sm:$0xff] }
  0xc0   :  { %v449_v52 = vadd.f32 %v2162_v59, %v2165_v2  ;;  %1126 = vmatpush.msrb.mxu3 %v931_v55  ;;  %v883_v43 = vld [vmem:[#allocation5 + $0x1b0] sm:$0xff] }
  0xc1   :  { %1212 = vmatpush.msra.mxu2 %v838_v42  ;;  %1144 = vmatpush.msra.mxu0 %v985_v35  ;;  %v888_v42 = vld [vmem:[#allocation5 + $0x1d8] sm:$0xff]  ;;  %v967_v35 = vld [vmem:[#allocation5 + $0x450] sm:$0xff] }
  0xc2   :  { %v2167_v60 = vpop.f32.mrf.mxu1 }
  0xc3   :  { %1213 = vmatpush.msra.mxu2 %v836_v61  ;;  %v478_v59 = vadd.f32 %v2167_v60, %v449_v52  ;;  %1145 = vmatpush.msra.mxu0 %v983_v22  ;;  %v929_v60 = vld [vmem:[#allocation5 + $0x320] sm:$0xff] }
  0xc4   :  { %1127 = vmatpush.msrb.mxu3 %v929_v60  ;;  %v881_v61 = vld [vmem:[#allocation5 + $0x1a0] sm:$0xff]  ;;  %v880_v60 = vld [vmem:[#allocation5 + $0x198] sm:$0xff] }
  0xc5   :  { %v2169_v12 = vpop.f32.mrf.mxu2  ;;  %1214 = vmatpush.msra.mxu2 %v834_v8  ;;  %1146 = vmatpush.msra.mxu0 %v981_v33  ;;  %v976_v8 = vld [vmem:[#allocation5 + $0x498] sm:$0xff]  ;;  %v965_v22 = vld [vmem:[#allocation5 + $0x440] sm:$0xff] }
  0xc6   :  { %v507_v27 = vadd.f32 %v2169_v12, %v478_v59  ;;  %v889_v12 = vld [vmem:[#allocation5 + $0x1e0] sm:$0xff]  ;;  %1128 = vmatpush.msrb.mxu3 %v927_v53  ;;  %v884_v59 = vld [vmem:[#allocation5 + $0x1b8] sm:$0xff]  ;;  %v871_v53 = vld [vmem:[#allocation5 + $0x150] sm:$0xff] }
  0xc7   :  { %1215 = vmatpush.msra.mxu2 %v832_v15  ;;  %1057 = vmatpush.msrb.mxu1 %v889_v12  ;;  %v877_v15 = vld [vmem:[#allocation5 + $0x180] sm:$0xff] }
  0xc8   :  { %v2172_v17 = vpop.f32.mrf.mxu3  ;;  %1129 = vmatpush.msrb.mxu3 %v925_v54  ;;  %v873_v33 = vld [vmem:[#allocation5 + $0x160] sm:$0xff] }
  0xc9   :  { %v2174_v20 = vpop.f32.mrf.mxu0  ;;  %1216 = vmatpush.msra.mxu2 %v830_v21  ;;  %v536_v40 = vadd.f32 %v2172_v17, %v507_v27  ;;  %v885_v17 = vld [vmem:[#allocation5 + $0x1c0] sm:$0xff]  ;;  %v882_v21 = vld [vmem:[#allocation5 + $0x1a8] sm:$0xff] }
  0xca   :  { %v452_v31 = vadd.f32 %v2174_v20, %v2165_v2  ;;  %v887_v2 = vld [vmem:[#allocation5 + $0x1d0] sm:$0xff]  ;;  %v977_v20 = vld [vmem:[#allocation5 + $0x4a0] sm:$0xff]  ;;  %1230 = vmatpush.msra.mxu3 %v892_v25 }
  0xcb   :  { %1058 = vmatpush.msrb.mxu1 %v887_v2  ;;  %v961_v54 = vld [vmem:[#allocation5 + $0x420] sm:$0xff] }
  0xcc   :  { %v2176_v23 = vpop.f32.mrf.mxu1  ;;  %1231 = vmatpush.msra.mxu3 %v890_v9  ;;  %v964_v9 = vld [vmem:[#allocation5 + $0x438] sm:$0xff] }
  0xcd   :  { %1059 = vmatpush.msrb.mxu1 %v885_v17 }
  0xce   :  { %1232 = vmatpush.msra.mxu3 %v888_v42  ;;  %v924_v42 = vld [vmem:[#allocation5 + $0x2f8] sm:$0xff] }
  0xcf   :  { %v2178_v28 = vpop.f32.mrf.mxu2  ;;  %1060 = vmatpush.msrb.mxu1 %v883_v43 }
  0xd0   :  { %1233 = vmatpush.msra.mxu3 %v886_v6  ;;  %v960_v6 = vld [vmem:[#allocation5 + $0x418] sm:$0xff] }
  0xd1   :  { %1061 = vmatpush.msrb.mxu1 %v881_v61 }
  0xd2   :  { %v2183_v24 = vpop.f32.mrf.mxu3  ;;  %1234 = vmatpush.msra.mxu3 %v884_v59 }
  0xd3   :  { %v558_v48 = vpop.f32.mrf.mxu0 }
  0xd4   :  { %v559_v18 = vadd.f32 %v558_v48, %v530_v16  ;;  %v979_v16 = vld [vmem:[#allocation5 + $0x4b0] sm:$0xff]  ;;  %v984_v48 = vld [vmem:[#allocation5 + $0x4d8] sm:$0xff]  ;;  %1235 = vmatpush.msra.mxu3 %v882_v21 }
  0xd5   :  { %1147 = vmatpush.msra.mxu0 %v979_v16 }
  0xd6   :  { %v587_v34 = vpop.f32.mrf.mxu1  ;;  %1236 = vmatpush.msra.mxu3 %v880_v60 }
  0xd7   :  { %v588_v37 = vadd.f32 %v587_v34, %v559_v18  ;;  %v481_v18 = vadd.f32 %v2176_v23, %v452_v31  ;;  %1148 = vmatpush.msra.mxu0 %v977_v20  ;;  %v975_v34 = vld [vmem:[#allocation5 + $0x490] sm:$0xff]  ;;  %v966_v20 = vld [vmem:[#allocation5 + $0x448] sm:$0xff] }
  0xd9   :  { %v2187_v45 = vmax.f32 %v588_v37, 0.0  ;;  %v2189_v47 = vpop.f32.mrf.mxu2  ;;  %v980_v37 = vld [vmem:[#allocation5 + $0x4b8] sm:$0xff]  ;;  %1149 = vmatpush.msra.mxu0 %v975_v34  ;;  %v510_v23 = vadd.f32 %v2178_v28, %v481_v18  ;;  %v969_v28 = vld [vmem:[#allocation5 + $0x460] sm:$0xff]  ;;  %v959_v18 = vld [vmem:[#allocation5 + $0x410] sm:$0xff] }
  0xdb   :  { %1101 = vmatmul.f32.vlgmr.msrb.gmra.mxu2 %v2187_v45  ;;  %1150 = vmatpush.msra.mxu0 %v973_v44  ;;  %v865_v44 = vld [vmem:[#allocation5 + $0x120] sm:$0xff] }
  0xdc   :  { %v2195_v4 = vpop.f32.mrf.mxu3  ;;  %1317 = vmatpush.msrb.mxu2 %v988_v62  ;;  %v970_v62 = vld [vmem:[#allocation5 + $0x468] sm:$0xff] }
  0xdd   :  { %v561_v11 = vpop.f32.mrf.mxu0  ;;  %1151 = vmatpush.msra.mxu0 %v971_v39  ;;  %v863_v39 = vld [vmem:[#allocation5 + $0x110] sm:$0xff] }
  0xde   :  { %v562_v13 = vadd.f32 %v561_v11, %v533_v10  ;;  %1318 = vmatpush.msrb.mxu2 %v986_v0  ;;  %v879_v10 = vld [vmem:[#allocation5 + $0x190] sm:$0xff]  ;;  %v539_v11 = vadd.f32 %v2183_v24, %v510_v23  ;;  %v878_v0 = vld [vmem:[#allocation5 + $0x188] sm:$0xff] }
  0xdf   :  { %1062 = vmatpush.msrb.mxu1 %v879_v10  ;;  %1152 = vmatpush.msra.mxu0 %v969_v28  ;;  %v875_v24 = vld [vmem:[#allocation5 + $0x170] sm:$0xff]  ;;  %v962_v23 = vld [vmem:[#allocation5 + $0x428] sm:$0xff] }
  0xe0   :  { %v590_v19 = vpop.f32.mrf.mxu1  ;;  %1319 = vmatpush.msrb.mxu2 %v984_v48  ;;  %1237 = vmatpush.msra.mxu3 %v878_v0  ;;  %v876_v48 = vld [vmem:[#allocation5 + $0x178] sm:$0xff]  ;;  %v870_v10 = vld [vmem:[#allocation5 + $0x148] sm:$0xff] }
  0xe1   :  { %v591_v26 = vadd.f32 %v590_v19, %v562_v13  ;;  %v974_v13 = vld [vmem:[#allocation5 + $0x488] sm:$0xff]  ;;  %v2220_v19 = vperm.slane %v2160_v57, 1  ;;  %1063 = vmatpush.msrb.mxu1 %v877_v15  ;;  %1153 = vmatpush.msra.mxu0 %v967_v35  ;;  %v963_v57 = vld [vmem:[#allocation5 + $0x430] sm:$0xff]  ;;  %v920_v35 = vld [vmem:[#allocation5 + $0x2d8] sm:$0xff] }
  0xe2   :  { %1320 = vmatpush.msrb.mxu2 %v982_v32  ;;  %v874_v32 = vld [vmem:[#allocation5 + $0x168] sm:$0xff]  ;;  %1238 = vmatpush.msra.mxu3 %v876_v48  ;;  %v916_v0 = vld [vmem:[#allocation5 + $0x2b8] sm:$0xff] }
  0xe3   :  { %v2199_v46 = vmax.f32 %v591_v26, 0.0  ;;  %v2201_v29 = vpop.f32.mrf.mxu2  ;;  %v972_v26 = vld [vmem:[#allocation5 + $0x478] sm:$0xff]  ;;  %1064 = vmatpush.msrb.mxu1 %v875_v24  ;;  %1154 = vmatpush.msra.mxu0 %v965_v22  ;;  %v617_v31 = vadd.f32 %v2189_v47, %v2220_v19  ;;  %v869_v47 = vld [vmem:[#allocation5 + $0x140] sm:$0xff]  ;;  %v922_v28 = vld [vmem:[#allocation5 + $0x2e8] sm:$0xff] }
  0xe4   :  { %1321 = vmatpush.msrb.mxu2 %v980_v37  ;;  %v957_v37 = vld [vmem:[#allocation5 + $0x400] sm:$0xff]  ;;  %1239 = vmatpush.msra.mxu3 %v874_v32  ;;  %v958_v15 = vld [vmem:[#allocation5 + $0x408] sm:$0xff]  ;;  %v1019_v24 = vld [vmem:[#allocation5 + $0x5f0] sm:$0xff] }
  0xe5   :  { %1104 = vmatmul.f32.gmra.mxu2 %v2199_v46  ;;  %1065 = vmatpush.msrb.mxu1 %v873_v33  ;;  %v783_v61 = vrot.slane %v2199_v46, 7  ;;  %v866_v22 = vld [vmem:[#allocation5 + $0x128] sm:$0xff] }
  0xe6   :  { %v2207_v50 = vpop.f32.mrf.mxu3  ;;  %1322 = vmatpush.msrb.mxu2 %v978_v51  ;;  %1155 = vmatpush.msra.mxu0 %v963_v57  ;;  %v620_v51 = vadd.f32 %v2201_v29, %v2220_v19  ;;  %v868_v29 = vld [vmem:[#allocation5 + $0x138] sm:$0xff]  ;;  %v862_v48 = vld [vmem:[#allocation5 + $0x108] sm:$0xff] }
  0xe7   :  { %v564_v58 = vpop.f32.mrf.mxu0  ;;  %1066 = vmatpush.msrb.mxu1 %v871_v53 }
  0xe8   :  { %v565_v1 = vadd.f32 %v564_v58, %v536_v40  ;;  %1323 = vmatpush.msrb.mxu2 %v976_v8  ;;  %v968_v40 = vld [vmem:[#allocation5 + $0x458] sm:$0xff]  ;;  %v781_v58 = vrot.slane %v2187_v45, 7  ;;  %1156 = vmatpush.msra.mxu0 %v961_v54 }
  0xe9   :  { %1067 = vmatpush.msrb.mxu1 %v869_v47  ;;  %v1013_v47 = vld [vmem:[#allocation5 + $0x5c0] sm:$0xff] }
  0xea   :  { %v593_v36 = vpop.f32.mrf.mxu1  ;;  %1324 = vmatpush.msrb.mxu2 %v974_v13  ;;  %1157 = vmatpush.msra.mxu0 %v959_v18  ;;  %v649_v13 = vadd.f32 %v2207_v50, %v620_v51  ;;  %v918_v50 = vld [vmem:[#allocation5 + $0x2c8] sm:$0xff]  ;;  %v1016_v51 = vld [vmem:[#allocation5 + $0x5d8] sm:$0xff] }
  0xeb   :  { %v594_v38 = vadd.f32 %v593_v36, %v565_v1  ;;  %v646_v1 = vadd.f32 %v2195_v4, %v617_v31  ;;  %v867_v36 = vld [vmem:[#allocation5 + $0x130] sm:$0xff]  ;;  %v872_v4 = vld [vmem:[#allocation5 + $0x158] sm:$0xff]  ;;  %v914_v18 = vld [vmem:[#allocation5 + $0x2a8] sm:$0xff] }
  0xec   :  { %1325 = vmatpush.msrb.mxu2 %v972_v26  ;;  %1068 = vmatpush.msrb.mxu1 %v867_v36  ;;  %v793_v26 = vsel %vm137_vm0, %v781_v58, %v783_v61  ;;  %v864_v31 = vld [vmem:[#allocation5 + $0x118] sm:$0xff]  ;;  %v1011_v36 = vld [vmem:[#allocation5 + $0x5b0] sm:$0xff] }
  0xed   :  { %v2211_v52 = vmax.f32 %v594_v38, 0.0  ;;  %v2213_v56 = vpop.f32.mrf.mxu2  ;;  %1158 = vmatpush.msra.mxu0 %v957_v37  ;;  %1240 = vmatpush.msra.mxu3 %v872_v4 }
  0xee   :  { %1326 = vmatpush.msrb.mxu2 %v970_v62  ;;  %1069 = vmatpush.msrb.mxu1 %v865_v44  ;;  %v623_v33 = vadd.f32 %v2213_v56, %v2220_v19 }
  0xef   :  { %1107 = vmatmul.f32.gmra.mxu2 %v2211_v52  ;;  %1241 = vmatpush.msra.mxu3 %v870_v10  ;;  %v785_v53 = vrot.slane %v2211_v52, 7  ;;  %v908_v10 = vld [vmem:[#allocation5 + $0x278] sm:$0xff] }
  0xf0   :  { %v2217_v5 = vpop.f32.mrf.mxu3  ;;  %1327 = vmatpush.msrb.mxu2 %v968_v40  ;;  %1070 = vmatpush.msrb.mxu1 %v863_v39  ;;  %v1015_v40 = vld [vmem:[#allocation5 + $0x5d0] sm:$0xff] }
  0xf1   :  { %v567_v14 = vpop.f32.mrf.mxu0  ;;  %1242 = vmatpush.msra.mxu3 %v868_v29  ;;  %v652_v56 = vadd.f32 %v2217_v5, %v623_v33  ;;  %v912_v5 = vld [vmem:[#allocation5 + $0x298] sm:$0xff]  ;;  %v999_v33 = vld [vmem:[#allocation5 + $0x550] sm:$0xff] }
  0xf2   :  { %v568_v55 = vadd.f32 %v567_v14, %v539_v11  ;;  %1328 = vmatpush.msrb.mxu2 %v966_v20  ;;  %v861_v11 = vld [vmem:[#allocation5 + $0x100] sm:$0xff] }
  0xf3   :  { %1071 = vmatpush.msrb.mxu1 %v861_v11  ;;  %1243 = vmatpush.msra.mxu3 %v866_v22  ;;  %v1005_v11 = vld [vmem:[#allocation5 + $0x580] sm:$0xff]  ;;  %v807_v22 = vrot.slane %v2199_v46, 1 }
  0xf4   :  { %v596_v27 = vpop.f32.mrf.mxu1  ;;  %1329 = vmatpush.msrb.mxu2 %v964_v9 }
  0xf5   :  { %v597_v30 = vadd.f32 %v596_v27, %v568_v55  ;;  %1172 = vmatpush.msra.mxu1 %v1019_v24  ;;  %1244 = vmatpush.msra.mxu3 %v864_v31  ;;  %v1010_v24 = vld [vmem:[#allocation5 + $0x5a8] sm:$0xff] }
  0xf6   :  { %1330 = vmatpush.msrb.mxu2 %v962_v23 }
  0xf7   :  { %v2224_v12 = vmax.f32 %v597_v30, 0.0  ;;  %v2226_v16 = vpop.f32.mrf.mxu2  ;;  %v1017_v30 = vld [vmem:[#allocation5 + $0x5e0] sm:$0xff]  ;;  %1245 = vmatpush.msra.mxu3 %v862_v48 }
  0xf8   :  { %1331 = vmatpush.msrb.mxu2 %v960_v6  ;;  %1173 = vmatpush.msra.mxu1 %v1017_v30  ;;  %v626_v44 = vadd.f32 %v2226_v16, %v2220_v19  ;;  %v805_v30 = vrot.slane %v2187_v45, 1  ;;  %v997_v48 = vld [vmem:[#allocation5 + $0x540] sm:$0xff] }
  0xf9   :  { %v787_v2 = vrot.slane %v2224_v12, 7  ;;  %1110 = vmatmul.f32.gmra.mxu2 %v2224_v12 }
  0xfa   :  { %v2232_v25 = vpop.f32.mrf.mxu3  ;;  %1332 = vmatpush.msrb.mxu2 %v958_v15  ;;  %1174 = vmatpush.msra.mxu1 %v1015_v40 }
  0xfb   :  { %v674_v17 = vpop.f32.mrf.mxu0  ;;  %v795_v34 = vsel %vm137_vm0, %v787_v2, %v781_v58  ;;  %v655_v19 = vadd.f32 %v2232_v25, %v626_v44  ;;  %v1003_v25 = vld [vmem:[#allocation5 + $0x570] sm:$0xff]  ;;  %v998_v44 = vld [vmem:[#allocation5 + $0x548] sm:$0xff] }
  0xfc   :  { %v675_v38 = vadd.f32 %v674_v17, %v646_v1  ;;  %1678 = vmatmul.msk.f32.vlgmr.msrb.gmra.mxu0 %vm150_vm1, %v795_v34  ;;  %v1020_v1 = vld [vmem:[#allocation5 + $0x5f8] sm:$0xff]  ;;  %1175 = vmatpush.msra.mxu1 %v1013_v47  ;;  %v898_v47 = vld [vmem:[#allocation5 + $0x228] sm:$0xff] }
  0xfd   :  { %v703_v43 = vpop.f32.mrf.mxu1  ;;  %1259 = vmatpush.msrb.mxu0 %v924_v42  ;;  %v910_v42 = vld [vmem:[#allocation5 + $0x288] sm:$0xff] }
  0xfe   :  { %v704_v8 = vadd.f32 %v703_v43, %v675_v38  ;;  %v1018_v38 = vld [vmem:[#allocation5 + $0x5e8] sm:$0xff]  ;;  %v1009_v43 = vld [vmem:[#allocation5 + $0x5a0] sm:$0xff]  ;;  %1176 = vmatpush.msra.mxu1 %v1011_v36 }
  0xff   :  { %1260 = vmatpush.msrb.mxu0 %v922_v28  ;;  %v906_v28 = vld [vmem:[#allocation5 + $0x268] sm:$0xff] }
 0x100   :  { %1177 = vmatpush.msra.mxu1 %v1009_v43 }
 0x101   :  { %v732_v59 = vpop.f32.mrf.mxu2  ;;  %1686 = vmatmul.msk.f32.vlgmr.msra.gmra.mxu2 %vm150_vm1, %v795_v34  ;;  %1261 = vmatpush.msrb.mxu0 %v920_v35  ;;  %v791_v34 = vsel %vm137_vm0, %v783_v61, %v785_v53  ;;  %v1007_v61 = vld [vmem:[#allocation5 + $0x590] sm:$0xff] }
 0x102   :  { %v733_v14 = vadd.f32 %v732_v59, %v704_v8  ;;  %v1014_v8 = vld [vmem:[#allocation5 + $0x5c8] sm:$0xff]  ;;  %1178 = vmatpush.msra.mxu1 %v1007_v61  ;;  %1698 = vmatpush.msra.mxu2 %v1390_v7 }
 0x103   :  { %v677_v55 = vpop.f32.mrf.mxu0  ;;  %v761_v21 = vpop.f32.mrf.mxu3  ;;  %1262 = vmatpush.msrb.mxu0 %v918_v50  ;;  %v1008_v50 = vld [vmem:[#allocation5 + $0x598] sm:$0xff] }
 0x104   :  { %v678_v27 = vadd.f32 %v677_v55, %v649_v13  ;;  %v762_v60 = vadd.f32 %v761_v21, %v733_v14  ;;  %1046 = vmatmul.f32.gmra.mxu0 %v793_v26  ;;  %v789_v13 = vsel %vm137_vm0, %v785_v53, %v787_v2  ;;  %v1012_v14 = vld [vmem:[#allocation5 + $0x5b8] sm:$0xff]  ;;  %1179 = vmatpush.msra.mxu1 %v1005_v11  ;;  %v902_v2 = vld [vmem:[#allocation5 + $0x248] sm:$0xff] }
 0x105   :  { %v706_v62 = vpop.f32.mrf.mxu1  ;;  %1263 = vmatpush.msrb.mxu0 %v916_v0  ;;  %v904_v55 = vld [vmem:[#allocation5 + $0x258] sm:$0xff]  ;;  %v1006_v0 = vld [vmem:[#allocation5 + $0x588] sm:$0xff]  ;;  %1699 = vmatpush.msra.mxu2 %v1389_v41 }
 0x106   :  { %v2252_v57 = vmax.f32 %v762_v60, 0.0  ;;  %v707_v54 = vadd.f32 %v706_v62, %v678_v27  ;;  %1180 = vmatpush.msra.mxu1 %v1003_v25  ;;  %v1001_v27 = vld [vmem:[#allocation5 + $0x560] sm:$0xff]  ;;  %v900_v53 = vld [vmem:[#allocation5 + $0x238] sm:$0xff]  ;;  %v942_v25 = vld [vmem:[#allocation5 + $0x388] sm:$0xff] }
 0x107   :  { %1264 = vmatpush.msrb.mxu0 %v914_v18 }
 0x108   :  { %1130 = vmatmul.f32.vlgmr.msrb.gmra.mxu3 %v2252_v57  ;;  %1181 = vmatpush.msra.mxu1 %v1001_v27  ;;  %v782_v36 = vrot.slane %v2252_v57, 7  ;;  %v934_v27 = vld [vmem:[#allocation5 + $0x348] sm:$0xff] }
 0x109   :  { %v735_v58 = vpop.f32.mrf.mxu2  ;;  %1220 = vmatmul.f32.gmra.mxu2 %v793_v26  ;;  %1346 = vmatpush.msrb.mxu3 %v1020_v1  ;;  %v896_v1 = vld [vmem:[#allocation5 + $0x218] sm:$0xff] }
 0x10a   :  { %v736_v20 = vadd.f32 %v735_v58, %v707_v54  ;;  %1265 = vmatpush.msrb.mxu0 %v912_v5  ;;  %v817_v54 = vsel %vm186_vm3, %v805_v30, %v807_v22  ;;  %1182 = vmatpush.msra.mxu1 %v999_v33  ;;  %v1000_v5 = vld [vmem:[#allocation5 + $0x558] sm:$0xff] }
 0x10b   :  { %v680_v32 = vpop.f32.mrf.mxu0  ;;  %v764_v17 = vpop.f32.mrf.mxu3  ;;  %1347 = vmatpush.msrb.mxu3 %v1018_v38 }
 0x10c   :  { %v681_v9 = vadd.f32 %v680_v32, %v652_v56  ;;  %v765_v37 = vadd.f32 %v764_v17, %v736_v20  ;;  %1679 = vmatmul.msk.f32.gmra.mxu0 %vm152_vm2, %v791_v34  ;;  %v1004_v56 = vld [vmem:[#allocation5 + $0x578] sm:$0xff]  ;;  %v995_v20 = vld [vmem:[#allocation5 + $0x530] sm:$0xff]  ;;  %1183 = vmatpush.msra.mxu1 %v997_v48  ;;  %v809_v32 = vrot.slane %v2211_v52, 1  ;;  %v1002_v17 = vld [vmem:[#allocation5 + $0x568] sm:$0xff] }
 0x10d   :  { %v709_v4 = vpop.f32.mrf.mxu1  ;;  %1266 = vmatpush.msrb.mxu0 %v910_v42  ;;  %1348 = vmatpush.msrb.mxu3 %v1016_v51  ;;  %v989_v42 = vld [vmem:[#allocation5 + $0x500] sm:$0xff]  ;;  %v956_v51 = vld [vmem:[#allocation5 + $0x3f8] sm:$0xff] }
 0x10e   :  { %v2265_v23 = vmax.f32 %v765_v37, 0.0  ;;  %v710_v39 = vadd.f32 %v709_v4, %v681_v9  ;;  %1184 = vmatpush.msra.mxu1 %v995_v20  ;;  %v894_v37 = vld [vmem:[#allocation5 + $0x208] sm:$0xff]  ;;  %v991_v4 = vld [vmem:[#allocation5 + $0x510] sm:$0xff]  ;;  %v815_v43 = vsel %vm186_vm3, %v807_v22, %v809_v32  ;;  %v936_v22 = vld [vmem:[#allocation5 + $0x358] sm:$0xff] }
 0x10f   :  { %1267 = vmatpush.msrb.mxu0 %v908_v10  ;;  %1349 = vmatpush.msrb.mxu3 %v1014_v8  ;;  %v811_v10 = vrot.slane %v2224_v12, 1  ;;  %v994_v8 = vld [vmem:[#allocation5 + $0x528] sm:$0xff]  ;;  %v1381_v20 = vld [vmem:[%s2599_s5 + $0x30] sm:$0xff] }
 0x110   :  { %1133 = vmatmul.f32.gmra.mxu3 %v2265_v23  ;;  %v784_v61 = vrot.slane %v2265_v23, 7  ;;  %v808_v49 = vrot.slane %v2265_v23, 1 }
 0x111   :  { %v738_v6 = vpop.f32.mrf.mxu2  ;;  %1687 = vmatmul.msk.f32.gmra.mxu2 %vm152_vm2, %v791_v34  ;;  %1268 = vmatpush.msrb.mxu0 %v906_v28  ;;  %v993_v34 = vld [vmem:[#allocation5 + $0x520] sm:$0xff]  ;;  %v992_v28 = vld [vmem:[#allocation5 + $0x518] sm:$0xff]  ;;  %v813_v11 = vsel %vm186_vm3, %v809_v32, %v811_v10  ;;  %v1380_v32 = vld [vmem:[%s2599_s5 + $0x28] sm:$0xff] }
 0x112   :  { %v739_v16 = vadd.f32 %v738_v6, %v710_v39  ;;  %1350 = vmatpush.msrb.mxu3 %v1012_v14  ;;  %1185 = vmatpush.msra.mxu1 %v993_v34  ;;  %v996_v39 = vld [vmem:[#allocation5 + $0x538] sm:$0xff]  ;;  %v954_v6 = vld [vmem:[#allocation5 + $0x3e8] sm:$0xff]  ;;  %v1379_v34 = vld [vmem:[%s2599_s5 + $0x20] sm:$0xff] }
 0x113   :  { %v683_v59 = vpop.f32.mrf.mxu0  ;;  %v767_v29 = vpop.f32.mrf.mxu3  ;;  %1269 = vmatpush.msrb.mxu0 %v904_v55  ;;  %v946_v14 = vld [vmem:[#allocation5 + $0x3a8] sm:$0xff]  ;;  %v819_v55 = vsel %vm186_vm3, %v811_v10, %v805_v30  ;;  %v928_v30 = vld [vmem:[#allocation5 + $0x318] sm:$0xff]  ;;  %v1405_v10 = vld [vmem:[%s2599_s5 + $0xf0] sm:$0xff] }
 0x114   :  { %v684_v15 = vadd.f32 %v683_v59, %v655_v19  ;;  %v768_v35 = vadd.f32 %v767_v29, %v739_v16  ;;  %1052 = vmatmul.f32.gmra.mxu0 %v789_v13  ;;  %1351 = vmatpush.msrb.mxu3 %v1010_v24  ;;  %v952_v19 = vld [vmem:[#allocation5 + $0x3d8] sm:$0xff]  ;;  %v794_v16 = vsel %vm137_vm0, %v782_v36, %v784_v61  ;;  %v950_v59 = vld [vmem:[#allocation5 + $0x3c8] sm:$0xff] }
 0x115   :  { %v712_v21 = vpop.f32.mrf.mxu1  ;;  %1270 = vmatpush.msrb.mxu0 %v902_v2  ;;  %1186 = vmatpush.msra.mxu1 %v991_v4  ;;  %v948_v29 = vld [vmem:[#allocation5 + $0x3b8] sm:$0xff]  ;;  %v938_v24 = vld [vmem:[#allocation5 + $0x368] sm:$0xff] }
 0x116   :  { %v2275_v26 = vmax.f32 %v768_v35, 0.0  ;;  %v713_v60 = vadd.f32 %v712_v21, %v684_v15  ;;  %1352 = vmatpush.msrb.mxu3 %v1008_v50  ;;  %v944_v15 = vld [vmem:[#allocation5 + $0x398] sm:$0xff]  ;;  %v930_v50 = vld [vmem:[#allocation5 + $0x328] sm:$0xff] }
 0x117   :  { %1271 = vmatpush.msrb.mxu0 %v900_v53  ;;  %1187 = vmatpush.msra.mxu1 %v989_v42  ;;  %v940_v21 = vld [vmem:[#allocation5 + $0x378] sm:$0xff] }
 0x118   :  { %1136 = vmatmul.f32.gmra.mxu3 %v2275_v26 }
 0x119   :  { %v741_v62 = vpop.f32.mrf.mxu2  ;;  %1226 = vmatmul.f32.gmra.mxu2 %v789_v13  ;;  %1353 = vmatpush.msrb.mxu3 %v1006_v0  ;;  %v786_v13 = vrot.slane %v2275_v26, 7 }
 0x11a   :  { %v742_v31 = vadd.f32 %v741_v62, %v713_v60  ;;  %1272 = vmatpush.msrb.mxu0 %v898_v47  ;;  %v932_v60 = vld [vmem:[#allocation5 + $0x338] sm:$0xff]  ;;  %v806_v62 = vrot.slane %v2252_v57, 1  ;;  %v1383_v47 = vld [vmem:[%s2599_s5 + $0x40] sm:$0xff] }
 0x11b   :  { %v770_v40 = vpop.f32.mrf.mxu3  ;;  %1354 = vmatpush.msrb.mxu3 %v1004_v56  ;;  %v792_v35 = vsel %vm137_vm0, %v784_v61, %v786_v13  ;;  %v1382_v56 = vld [vmem:[%s2599_s5 + $0x38] sm:$0xff]  ;;  %v2431_v61 = vld [vmem:[%s2598_s4] sm:$0x3] }
 0x11c   :  { %v771_v58 = vadd.f32 %v770_v40, %v742_v31  ;;  %1159 = vmatmul.f32.vlgmr.msra.gmra.mxu0 %v817_v54  ;;  %v818_v33 = vsel %vm186_vm3, %v806_v62, %v808_v49  ;;  %v926_v31 = vld [vmem:[#allocation5 + $0x308] sm:$0xff] }
 0x11d   :  { %1273 = vmatpush.msrb.mxu0 %v896_v1  ;;  %1355 = vmatpush.msrb.mxu3 %v1002_v17 }
 0x11e   :  { %v2284_v18 = vmax.f32 %v771_v58, 0.0  ;;  %v1384_v58 = vld [vmem:[%s2599_s5 + $0x48] sm:$0xff] }
 0x11f   :  { %1274 = vmatpush.msrb.mxu0 %v894_v37  ;;  %1356 = vmatpush.msrb.mxu3 %v1000_v5 }
 0x120   :  { %v788_v9 = vrot.slane %v2284_v18, 7  ;;  %1139 = vmatmul.f32.gmra.mxu3 %v2284_v18  ;;  %v812_v0 = vrot.slane %v2284_v18, 1 }
 0x121   :  { %1333 = vmatmul.f32.vlgmr.msrb.gmra.mxu2 %v817_v54  ;;  %1357 = vmatpush.msrb.mxu3 %v998_v44 }
 0x122   :  { %v796_v38 = vsel %vm137_vm0, %v788_v9, %v782_v36  ;;  %v790_v2 = vsel %vm137_vm0, %v786_v13, %v788_v9  ;;  %v820_v40 = vsel %vm186_vm3, %v812_v0, %v806_v62  ;;  %1407 = vmatpush.msra.mxu0 %v1390_v7  ;;  %v1378_v36 = vld [vmem:[%s2599_s5 + $0x18] sm:$0xff]  ;;  %v1377_v9 = vld [vmem:[%s2599_s5 + $0x10] sm:$0xff]  ;;  %v1395_v62 = vld [vmem:[%s2599_s5 + $0xa0] sm:$0xff]  ;;  %vm1596_vm0 = vcmask 523264  }
 0x123   :  { %1680 = vmatmul.msk.f32.vlgmr.msrb.gmra.mxu1 %vm150_vm1, %v796_v38  ;;  %1358 = vmatpush.msrb.mxu3 %v996_v39 }
 0x124   :  { %1682 = vmatmul.msk.f32.gmra.mxu0 %vm204_vm4, %v815_v43  ;;  %1288 = vmatpush.msrb.mxu1 %v956_v51  ;;  %v1406_v51 = vld [vmem:[%s2599_s5 + $0xf8] sm:$0xff] }
 0x125   :  { %1359 = vmatpush.msrb.mxu3 %v994_v8  ;;  %1408 = vmatpush.msra.mxu0 %v1389_v41  ;;  %v1393_v41 = vld [vmem:[%s2599_s5 + $0x90] sm:$0xff] }
 0x126   :  { %1289 = vmatpush.msrb.mxu1 %v954_v6  ;;  %v1404_v6 = vld [vmem:[%s2599_s5 + $0xe8] sm:$0xff] }
 0x127   :  { %1360 = vmatpush.msrb.mxu3 %v992_v28 }
 0x128   :  { %1688 = vmatmul.msk.f32.vlgmr.msra.gmra.mxu3 %vm150_vm1, %v796_v38  ;;  %1290 = vmatpush.msrb.mxu1 %v952_v19  ;;  %v1376_v38 = vld [vmem:[%s2599_s5 + $0x8] sm:$0xff]  ;;  %v1403_v19 = vld [vmem:[%s2599_s5 + $0xe0] sm:$0xff]  ;;  %vm1598_vm1 = vcmask 654336  }
 0x129   :  { %1690 = vmatmul.msk.f32.gmra.mxu2 %vm204_vm4, %v815_v43  ;;  %1361 = vmatpush.msrb.mxu3 %v990_v63  ;;  %v1375_v43 = vld [vmem:[%s2599_s5] sm:$0xff] }
 0x12a   :  { %1291 = vmatpush.msrb.mxu1 %v950_v59  ;;  %v1402_v59 = vld [vmem:[%s2599_s5 + $0xd8] sm:$0xff] }
 0x12b   :  { %1075 = vmatmul.f32.gmra.mxu1 %v794_v16  ;;  %1714 = vmatpush.msra.mxu3 %v1406_v51 }
 0x12c   :  { %1165 = vmatmul.f32.gmra.mxu0 %v813_v11  ;;  %1292 = vmatpush.msrb.mxu1 %v948_v29  ;;  %v1401_v29 = vld [vmem:[%s2599_s5 + $0xd0] sm:$0xff] }
 0x12d   :  { %1715 = vmatpush.msra.mxu3 %v1405_v10 }
 0x12e   :  { %1293 = vmatpush.msrb.mxu1 %v946_v14  ;;  %v1400_v14 = vld [vmem:[%s2599_s5 + $0xc8] sm:$0xff] }
 0x12f   :  { %1716 = vmatpush.msra.mxu3 %v1404_v6 }
 0x130   :  { %1249 = vmatmul.f32.gmra.mxu3 %v794_v16  ;;  %1294 = vmatpush.msrb.mxu1 %v944_v15  ;;  %v2447_v16 = vperm.slane %v2431_v61, 0 }
 0x131   :  { %1339 = vmatmul.f32.gmra.mxu2 %v813_v11  ;;  %1717 = vmatpush.msra.mxu3 %v1403_v19 }
 0x132   :  { %1295 = vmatpush.msrb.mxu1 %v942_v25 }
 0x133   :  { %1681 = vmatmul.msk.f32.gmra.mxu1 %vm152_vm2, %v792_v35  ;;  %1718 = vmatpush.msra.mxu3 %v1402_v59 }
 0x134   :  { %1683 = vmatmul.msk.f32.gmra.mxu0 %vm206_vm5, %v819_v55  ;;  %1296 = vmatpush.msrb.mxu1 %v940_v21 }
 0x135   :  { %1719 = vmatpush.msra.mxu3 %v1401_v29 }
 0x136   :  { %1297 = vmatpush.msrb.mxu1 %v938_v24 }
 0x137   :  { %1720 = vmatpush.msra.mxu3 %v1400_v14 }
 0x138   :  { %1689 = vmatmul.msk.f32.gmra.mxu3 %vm152_vm2, %v792_v35  ;;  %1298 = vmatpush.msrb.mxu1 %v936_v22  ;;  %v1399_v35 = vld [vmem:[%s2599_s5 + $0xc0] sm:$0xff]  ;;  %v1398_v22 = vld [vmem:[%s2599_s5 + $0xb8] sm:$0xff]  ;;  %vm1600_vm2 = vcmask 785408  }
 0x139   :  { %1691 = vmatmul.msk.f32.gmra.mxu2 %vm206_vm5, %v819_v55  ;;  %1721 = vmatpush.msra.mxu3 %v1399_v35 }
 0x13a   :  { %1299 = vmatpush.msrb.mxu1 %v934_v27  ;;  %v1397_v27 = vld [vmem:[%s2599_s5 + $0xb0] sm:$0xff] }
 0x13b   :  { %1081 = vmatmul.f32.gmra.mxu1 %v790_v2  ;;  %1722 = vmatpush.msra.mxu3 %v1398_v22 }
 0x13c   :  { %1275 = vmatmul.f32.vlgmr.msrb.gmra.mxu0 %v2187_v45  ;;  %1300 = vmatpush.msrb.mxu1 %v932_v60  ;;  %v810_v45 = vrot.slane %v2275_v26, 1 }
 0x13d   :  { %1723 = vmatpush.msra.mxu3 %v1397_v27 }
 0x13e   :  { %1301 = vmatpush.msrb.mxu1 %v930_v50  ;;  %v816_v53 = vsel %vm186_vm3, %v808_v49, %v810_v45  ;;  %v1396_v50 = vld [vmem:[%s2599_s5 + $0xa8] sm:$0xff] }
 0x13f   :  { %1724 = vmatpush.msra.mxu3 %v1396_v50 }
 0x140   :  { %1255 = vmatmul.f32.gmra.mxu3 %v790_v2  ;;  %1302 = vmatpush.msrb.mxu1 %v928_v30 }
 0x141   :  { %1725 = vmatpush.msra.mxu3 %v1395_v62 }
 0x142   :  { %1303 = vmatpush.msrb.mxu1 %v926_v31 }
 0x143   :  { %1188 = vmatmul.f32.vlgmr.msra.gmra.mxu1 %v818_v33 }
 0x144   :  { %1278 = vmatmul.f32.gmra.mxu0 %v2199_v46  ;;  %v814_v46 = vsel %vm186_vm3, %v810_v45, %v812_v0  ;;  %1436 = vmatpush.msra.mxu1 %v1406_v51  ;;  %v1394_v0 = vld [vmem:[%s2599_s5 + $0x98] sm:$0xff]  ;;  %vm1602_vm3 = vcmask 916480  }
 0x145   :  { %1726 = vmatpush.msra.mxu3 %v1394_v0 }
 0x146   :  { %1437 = vmatpush.msra.mxu1 %v1405_v10 }
 0x147   :  { %1727 = vmatpush.msra.mxu3 %v1393_v41 }
 0x148   :  { %1362 = vmatmul.f32.vlgmr.msrb.gmra.mxu3 %v818_v33  ;;  %1438 = vmatpush.msra.mxu1 %v1404_v6 }
 0x14a   :  { %1439 = vmatpush.msra.mxu1 %v1403_v19 }
 0x14b   :  { %1684 = vmatmul.msk.f32.gmra.mxu1 %vm204_vm4, %v816_v53 }
 0x14c   :  { %1281 = vmatmul.f32.gmra.mxu0 %v2211_v52  ;;  %v1388_v52 = vld [vmem:[%s2599_s5 + $0x68] sm:$0xff]  ;;  %1440 = vmatpush.msra.mxu1 %v1402_v59 }
 0x14d   :  { %1409 = vmatpush.msra.mxu0 %v1388_v52  ;;  %1700 = vmatpush.msra.mxu2 %v1388_v52 }
 0x14e   :  { %1441 = vmatpush.msra.mxu1 %v1401_v29 }
 0x150   :  { %1692 = vmatmul.msk.f32.gmra.mxu3 %vm204_vm4, %v816_v53  ;;  %1442 = vmatpush.msra.mxu1 %v1400_v14  ;;  %vm1606_vm4 = vcmask 1040384  }
 0x152   :  { %1443 = vmatpush.msra.mxu1 %v1399_v35 }
 0x153   :  { %1194 = vmatmul.f32.gmra.mxu1 %v814_v46 }
 0x154   :  { %1284 = vmatmul.f32.gmra.mxu0 %v2224_v12  ;;  %v1387_v12 = vld [vmem:[%s2599_s5 + $0x60] sm:$0xff]  ;;  %1444 = vmatpush.msra.mxu1 %v1398_v22 }
 0x155   :  { %1410 = vmatpush.msra.mxu0 %v1387_v12  ;;  %1701 = vmatpush.msra.mxu2 %v1387_v12  ;;  %v1392_v12 = vld [vmem:[%s2599_s5 + $0x88] sm:$0xff] }
 0x156   :  { %1445 = vmatpush.msra.mxu1 %v1397_v27  ;;  %1728 = vmatpush.msra.mxu3 %v1392_v12 }
 0x158   :  { %1368 = vmatmul.f32.gmra.mxu3 %v814_v46  ;;  %1446 = vmatpush.msra.mxu1 %v1396_v50 }
 0x15a   :  { %1447 = vmatpush.msra.mxu1 %v1395_v62 }
 0x15b   :  { %1685 = vmatmul.msk.f32.gmra.mxu1 %vm206_vm5, %v820_v40 }
 0x15c   :  { %1448 = vmatpush.msra.mxu1 %v1394_v0 }
 0x15e   :  { %1449 = vmatpush.msra.mxu1 %v1393_v41 }
 0x160   :  { %1693 = vmatmul.msk.f32.gmra.mxu3 %vm206_vm5, %v820_v40  ;;  %1450 = vmatpush.msra.mxu1 %v1392_v12 }
 0x163   :  { %1304 = vmatmul.f32.vlgmr.msrb.gmra.mxu1 %v2252_v57  ;;  %v2371_v57 = vpop.f32.mrf.mxu2 }
 0x16b   :  { %1307 = vmatmul.f32.gmra.mxu1 %v2265_v23  ;;  %v1386_v23 = vld [vmem:[%s2599_s5 + $0x58] sm:$0xff] }
 0x16c   :  { %1411 = vmatpush.msra.mxu0 %v1386_v23  ;;  %1702 = vmatpush.msra.mxu2 %v1386_v23 }
 0x173   :  { %1310 = vmatmul.f32.gmra.mxu1 %v2275_v26  ;;  %v1385_v26 = vld [vmem:[%s2599_s5 + $0x50] sm:$0xff] }
 0x174   :  { %1412 = vmatpush.msra.mxu0 %v1385_v26  ;;  %1703 = vmatpush.msra.mxu2 %v1385_v26 }
 0x176   :  { %1413 = vmatpush.msra.mxu0 %v1384_v58  ;;  %1704 = vmatpush.msra.mxu2 %v1384_v58 }
 0x178   :  { %1414 = vmatpush.msra.mxu0 %v1383_v47  ;;  %1705 = vmatpush.msra.mxu2 %v1383_v47 }
 0x179   :  { %v2363_v3 = vpop.f32.mrf.mxu0 }
 0x17a   :  { %1415 = vmatpush.msra.mxu0 %v1382_v56  ;;  %1706 = vmatpush.msra.mxu2 %v1382_v56  ;;  %v1045_v63 = vadd.f32 %v2363_v3, %v2447_v16 }
 0x17b   :  { %1313 = vmatmul.f32.gmra.mxu1 %v2284_v18  ;;  %v2395_v18 = vpop.f32.mrf.mxu2 }
 0x17c   :  { %1416 = vmatpush.msra.mxu0 %v1381_v20  ;;  %1707 = vmatpush.msra.mxu2 %v1381_v20 }
 0x17e   :  { %1417 = vmatpush.msra.mxu0 %v1380_v32  ;;  %1708 = vmatpush.msra.mxu2 %v1380_v32 }
 0x180   :  { %1418 = vmatpush.msra.mxu0 %v1379_v34  ;;  %1709 = vmatpush.msra.mxu2 %v1379_v34 }
 0x181   :  { %v2381_v48 = vpop.f32.mrf.mxu0 }
 0x182   :  { %1419 = vmatpush.msra.mxu0 %v1378_v36  ;;  %1710 = vmatpush.msra.mxu2 %v1378_v36  ;;  %v1048_v2 = vadd.f32 %v2381_v48, %v2447_v16 }
 0x183   :  { %v2413_v37 = vpop.f32.mrf.mxu2 }
 0x184   :  { %1420 = vmatpush.msra.mxu0 %v1377_v9  ;;  %1711 = vmatpush.msra.mxu2 %v1377_v9 }
 0x186   :  { %1421 = vmatpush.msra.mxu0 %v1376_v38  ;;  %1712 = vmatpush.msra.mxu2 %v1376_v38 }
 0x188   :  { %1422 = vmatpush.msra.mxu0 %v1375_v43  ;;  %1713 = vmatpush.msra.mxu2 %v1375_v43  ;;  %v1024_v43 = vperm.slane %v2431_v61, 1 }
 0x189   :  { %v2402_v17 = vpop.f32.mrf.mxu0 }
 0x18a   :  { %v1051_v46 = vadd.f32 %v2402_v17, %v2447_v16 }
 0x18b   :  { %v2379_v54 = vpop.f32.mrf.mxu3  ;;  %v2433_v39 = vpop.f32.mrf.mxu2 }
 0x191   :  { %v2423_v44 = vpop.f32.mrf.mxu0 }
 0x192   :  { %v1054_v58 = vadd.f32 %v2423_v44, %v2447_v16 }
 0x193   :  { %v2397_v1 = vpop.f32.mrf.mxu3  ;;  %v2460_v15 = vpop.f32.mrf.mxu2 }
 0x199   :  { %v1160_v28 = vpop.f32.mrf.mxu0 }
 0x19b   :  { %v2418_v4 = vpop.f32.mrf.mxu3  ;;  %v1221_v30 = vpop.f32.mrf.mxu2 }
 0x1a0   :  { %v1073_v5 = vpop.f32.mrf.mxu1 }
 0x1a1   :  { %v1074_v13 = vadd.f32 %v1073_v5, %v1045_v63  ;;  %v1163_v21 = vpop.f32.mrf.mxu0 }
 0x1a3   :  { %v2441_v8 = vpop.f32.mrf.mxu3  ;;  %v1103_v25 = vadd.f32 %v2371_v57, %v1074_v13  ;;  %v1391_v57 = vld [vmem:[%s2599_s5 + $0x80] sm:$0xff] }
 0x1a4   :  { %1451 = vmatpush.msra.mxu1 %v1391_v57  ;;  %1729 = vmatpush.msra.mxu3 %v1391_v57 }
 0x1a5   :  { %v1132_v49 = vadd.f32 %v2379_v54, %v1103_v25  ;;  %v1224_v54 = vpop.f32.mrf.mxu2 }
 0x1a7   :  { %v1161_v31 = vadd.f32 %v1160_v28, %v1132_v49 }
 0x1a8   :  { %v1076_v42 = vpop.f32.mrf.mxu1 }
 0x1a9   :  { %v1077_v60 = vadd.f32 %v1076_v42, %v1048_v2  ;;  %v1166_v7 = vpop.f32.mrf.mxu0 }
 0x1ab   :  { %v2465_v55 = vpop.f32.mrf.mxu3  ;;  %v1106_v33 = vadd.f32 %v2395_v18, %v1077_v60 }
 0x1ad   :  { %v1135_v52 = vadd.f32 %v2397_v1, %v1106_v33  ;;  %v1227_v9 = vpop.f32.mrf.mxu2 }
 0x1ae   :  { %v1228_v62 = vadd.f32 %v1227_v9, %v1024_v43 }
 0x1af   :  { %v1164_v26 = vadd.f32 %v1163_v21, %v1135_v52  ;;  %v1225_v21 = vadd.f32 %v1224_v54, %v1024_v43  ;;  %v1485_v54 = vld [vmem:[%s2600_s6 + $0x8] sm:$0xff] }
 0x1b0   :  { %v1079_v11 = vpop.f32.mrf.mxu1  ;;  %1510 = vmatpush.msrb.mxu2 %v1485_v54 }
 0x1b1   :  { %v1080_v3 = vadd.f32 %v1079_v11, %v1051_v46  ;;  %v1169_v1 = vpop.f32.mrf.mxu0  ;;  %v1222_v11 = vadd.f32 %v1221_v30, %v1024_v43 }
 0x1b3   :  { %v1250_v45 = vpop.f32.mrf.mxu3  ;;  %v1109_v23 = vadd.f32 %v2413_v37, %v1080_v3 }
 0x1b4   :  { %v1251_v63 = vadd.f32 %v1250_v45, %v1222_v11 }
 0x1b5   :  { %v1138_v18 = vadd.f32 %v2418_v4, %v1109_v23  ;;  %v1219_v4 = vadd.f32 %v2460_v15, %v1024_v43 }
 0x1b7   :  { %v1167_v17 = vadd.f32 %v1166_v7, %v1138_v18  ;;  %v1248_v10 = vadd.f32 %v2465_v55, %v1219_v4 }
 0x1b8   :  { %v1082_v24 = vpop.f32.mrf.mxu1 }
 0x1b9   :  { %v1083_v20 = vadd.f32 %v1082_v24, %v1054_v58  ;;  %v1276_v38 = vpop.f32.mrf.mxu0 }
 0x1ba   :  { %v1277_v19 = vadd.f32 %v1276_v38, %v1248_v10 }
 0x1bb   :  { %v1253_v56 = vpop.f32.mrf.mxu3  ;;  %v1112_v32 = vadd.f32 %v2433_v39, %v1083_v20  ;;  %v1334_v39 = vpop.f32.mrf.mxu2  ;;  %v1517_v20 = vld [vmem:[%s2602_s8] sm:$0x3]  ;;  %s1648_s8 = sshll.u32 %s2604_s10, 4  ;;  %s1649_s8 = int_to_ptr.hbm [resolvable:$true] %s1648_s8 }
 0x1bc   :  { %v1254_v24 = vadd.f32 %v1253_v56, %v1225_v21  ;;  %1695 = vmatpush.msk.msrb.mxu3 %vm1526_vm6, %v1517_v20  ;;  %v1742_v21 = vld [vmem:[%s2603_s9] ss:$0 sm:$0xff]  ;;  %s1838_s9 = smov 48  }
 0x1bd   :  { %v1141_v37 = vadd.f32 %v2441_v8, %v1112_v32 }
 0x1bf   :  { %v1170_v44 = vadd.f32 %v1169_v1, %v1141_v37 }
 0x1c0   :  { %v1189_v53 = vpop.f32.mrf.mxu1 }
 0x1c1   :  { %v2489_v40 = vadd.f32 %v1189_v53, %v1161_v31  ;;  %v1279_v16 = vpop.f32.mrf.mxu0 }
 0x1c2   :  { %v1280_v13 = vadd.f32 %v1279_v16, %v1251_v63 }
 0x1c3   :  { %1423 = vmatmul.f32.vlgmr.msra.gmra.mxu0 %v2489_v40  ;;  %v1256_v5 = vpop.f32.mrf.mxu3  ;;  %v1337_v29 = vpop.f32.mrf.mxu2 }
 0x1c4   :  { %v1257_v31 = vadd.f32 %v1256_v5, %v1228_v62 }
 0x1c8   :  { %v1192_v48 = vpop.f32.mrf.mxu1 }
 0x1c9   :  { %v2505_v47 = vadd.f32 %v1192_v48, %v1164_v26  ;;  %v1282_v25 = vpop.f32.mrf.mxu0  ;;  %v1484_v48 = vld [vmem:[%s2600_s6] sm:$0xff] }
 0x1ca   :  { %v1283_v2 = vadd.f32 %v1282_v25, %v1254_v24  ;;  %1511 = vmatpush.msrb.mxu2 %v1484_v48 }
 0x1cb   :  { %1426 = vmatmul.f32.gmra.mxu0 %v2505_v47  ;;  %v1363_v6 = vpop.f32.mrf.mxu3  ;;  %v1340_v27 = vpop.f32.mrf.mxu2 }
 0x1d0   :  { %v1195_v34 = vpop.f32.mrf.mxu1 }
 0x1d1   :  { %v2510_v36 = vadd.f32 %v1195_v34, %v1167_v17  ;;  %v1285_v33 = vpop.f32.mrf.mxu0 }
 0x1d2   :  { %v1286_v53 = vadd.f32 %v1285_v33, %v1257_v31 }
 0x1d3   :  { %1429 = vmatmul.f32.gmra.mxu0 %v2510_v36  ;;  %v1366_v14 = vpop.f32.mrf.mxu3  ;;  %v1343_v7 = vpop.f32.mrf.mxu2 }
 0x1d8   :  { %v1198_v42 = vpop.f32.mrf.mxu1 }
 0x1d9   :  { %v2515_v51 = vadd.f32 %v1198_v42, %v1170_v44 }
 0x1db   :  { %1432 = vmatmul.f32.vlgmr.msra.gmra.mxu2 %v2515_v51  ;;  %v1369_v50 = vpop.f32.mrf.mxu3 }
 0x1e0   :  { %v1305_v28 = vpop.f32.mrf.mxu1 }
 0x1e1   :  { %v1306_v8 = vadd.f32 %v1305_v28, %v1277_v19 }
 0x1e3   :  { %v1335_v59 = vadd.f32 %v1334_v39, %v1306_v8  ;;  %v1372_v3 = vpop.f32.mrf.mxu3 }
 0x1e5   :  { %v2520_v61 = vadd.f32 %v1363_v6, %v1335_v59 }
 0x1e7   :  { %1452 = vmatmul.f32.vlgmr.msra.gmra.mxu1 %v2520_v61 }
 0x1e8   :  { %v1308_v15 = vpop.f32.mrf.mxu1 }
 0x1e9   :  { %v1309_v35 = vadd.f32 %v1308_v15, %v1280_v13 }
 0x1eb   :  { %v1338_v55 = vadd.f32 %v1337_v29, %v1309_v35 }
 0x1ed   :  { %v2523_v22 = vadd.f32 %v1366_v14, %v1338_v55  ;;  %v1741_v14 = vld [vmem:[%s2601_s7] ss:$0 sm:$0xff]  ;;  %s1837_s7 = smov 80  }
 0x1ef   :  { %1455 = vmatmul.f32.gmra.mxu1 %v2523_v22 }
 0x1f0   :  { %v1311_v60 = vpop.f32.mrf.mxu1 }
 0x1f1   :  { %v1312_v49 = vadd.f32 %v1311_v60, %v1283_v2 }
 0x1f3   :  { %v1341_v30 = vadd.f32 %v1340_v27, %v1312_v49 }
 0x1f5   :  { %v2526_v45 = vadd.f32 %v1369_v50, %v1341_v30 }
 0x1f7   :  { %1458 = vmatmul.f32.gmra.mxu1 %v2526_v45 }
 0x1f8   :  { %v1314_v0 = vpop.f32.mrf.mxu1 }
 0x1f9   :  { %v1315_v46 = vadd.f32 %v1314_v0, %v1286_v53 }
 0x1fb   :  { %v1344_v41 = vadd.f32 %v1343_v7, %v1315_v46 }
 0x1fd   :  { %v2529_v52 = vadd.f32 %v1372_v3, %v1344_v41 }
 0x1ff   :  { %1461 = vmatmul.f32.vlgmr.msra.gmra.mxu3 %v2529_v52 }
 0x240   :  { %v1424_v57 = vpop.f32.mrf.mxu0 }
 0x248   :  { %v1427_v26 = vpop.f32.mrf.mxu0 }
 0x250   :  { %v1430_v9 = vpop.f32.mrf.mxu0 }
 0x25e   :  { %v1433_v5 = vpop.f32.mrf.mxu2 }
 0x264   :  { %v1453_v12 = vpop.f32.mrf.mxu1 }
 0x265   :  { %v1454_v56 = vadd.f32 %v1453_v12, %v1424_v57 }
 0x267   :  { %v1466_v1 = vsel %vm1465_vm7, %v1454_v56, 0.0 }
 0x26c   :  { %v1456_v23 = vpop.f32.mrf.mxu1 }
 0x26d   :  { %v1457_v58 = vadd.f32 %v1456_v23, %v1427_v26 }
 0x26f   :  { %v1467_v18 = vsel %vm1465_vm7, %v1457_v58, 0.0 }
 0x270   :  { %v1468_v32 = vadd.f32 %v1467_v18, %v1466_v1 }
 0x272   :  { %v1469_v17 = vrot.slane %v1468_v32, 4 }
 0x274   :  { %v1459_v34 = vpop.f32.mrf.mxu1  ;;  %v1470_v38 = vadd.f32 %v1469_v17, %v1468_v32 }
 0x275   :  { %v1460_v37 = vadd.f32 %v1459_v34, %v1430_v9 }
 0x276   :  { %v1471_v39 = vrot.slane %v1470_v38, 2 }
 0x277   :  { %v1475_v42 = vsel %vm1465_vm7, %v1460_v37, 0.0 }
 0x278   :  { %v1472_v19 = vadd.f32 %v1471_v39, %v1470_v38 }
 0x27a   :  { %v1473_v8 = vrot.slane %v1472_v19, 1 }
 0x27c   :  { %v1474_v63 = vadd.f32 %v1473_v8, %v1472_v19 }
 0x282   :  { %v1462_v43 = vpop.f32.mrf.mxu3 }
 0x283   :  { %v1463_v44 = vadd.f32 %v1462_v43, %v1433_v5 }
 0x285   :  { %v1476_v4 = vsel %vm1465_vm7, %v1463_v44, 0.0 }
 0x286   :  { %v1477_v10 = vadd.f32 %v1476_v4, %v1475_v42 }
 0x288   :  { %v1478_v6 = vrot.slane %v1477_v10, 4 }
 0x28a   :  { %v1479_v16 = vadd.f32 %v1478_v6, %v1477_v10 }
 0x28c   :  { %v1480_v28 = vrot.slane %v1479_v16, 2 }
 0x28e   :  { %v1481_v11 = vadd.f32 %v1480_v28, %v1479_v16  ;;  %v1747_v28 = vld [vmem:[%s2594_s0] sm:$0xff] }
 0x290   :  { %v1482_v59 = vrot.slane %v1481_v11, 1 }
 0x292   :  { %v1483_v29 = vadd.f32 %v1482_v59, %v1481_v11  ;;  %v1751_v11 = vld [vmem:[%s2594_s0 + $0x20] sm:$0xff] }
 0x294   :  { %v1493_v13 = vsel %vm1492_vm8, %v1483_v29, %v1474_v63  ;;  %v1752_v63 = vld [vmem:[%s2594_s0 + $0x28] sm:$0xff] }
 0x295   :  { %1694 = vmatmul.msk.f32.vlgmr.msrb.gmra.mxu2 %vm1465_vm7, %v1493_v13 }
 0x318   :  { %v1513_v15 = vpop.f32.mrf.mxu2 }
 0x319   :  { %v1514_v35 = vadd.f32 %v1741_v14, %v1513_v15  ;;  %v1754_v14 = vld [vmem:[%s2594_s0 + $0x38] sm:$0xff] }
 0x31b   :  { %v1516_v25 = vmax.f32 %v1514_v35, 0.0 }
 0x31d   :  { %1696 = vmatmul.msk.f32.vlgmr.msrb.gmra.mxu3 %vm1522_vm9, %v1516_v25 }
 0x3a0   :  { %v1547_v55 = vpop.f32.mrf.mxu3 }
 0x3a1   :  { %v1548_v24 = vadd.f32 %v1742_v21, %v1547_v55 }
 0x3a3   :  { %v1697_v2 = vmul.f32 -1.442695, %v1548_v24 }
 0x3a5   :  { %1743 = vpow2.f32 %v1697_v2 }
 0x3ab   :  { %v1744_v27 = vpop.eup %1743 }
 0x3ac   :  { %v1553_v60 = vadd.f32 1.0, %v1744_v27 }
 0x3ae   :  { %1745 = vrcp.f32 %v1553_v60  ;;  %v1565_v30 = vand.u32 2147483648, %v1553_v60  ;;  %v1563_v31 = vand.u32 2147483647, %v1553_v60  ;;  %vm1559_vm11 = vweird.f32 %v1553_v60 }
 0x3b0   :  { %v1566_v0 = vor.u32 1.1754944e-38, %v1565_v30  ;;  %vm1564_vm13 = vcmp.eq.f32.partialorder %v1563_v31, 8.507059e+37 }
 0x3b4   :  { %v1746_v49 = vpop.eup %1745 }
 0x3b5   :  { %v1555_v50 = vmul.f32 %v1746_v49, %v1553_v60  ;;  %vm1560_vm10 = vweird.f32 %v1746_v49 }
 0x3b6   :  { %vm1561_vm12 = vmor %vm1559_vm11, %vm1560_vm10 }
 0x3b7   :  { %v1556_v62 = vsub.f32 1.0, %v1555_v50 }
 0x3b9   :  { %v1557_v33 = vmul.f32 %v1746_v49, %v1556_v62 }
 0x3bb   :  { %v1558_v53 = vadd.f32 %v1746_v49, %v1557_v33 }
 0x3bd   :  { %v1562_v46 = vsel %vm1561_vm12, %v1746_v49, %v1558_v53 }
 0x3be   :  { %v1567_v7 = vsel %vm1564_vm13, %v1566_v0, %v1562_v46 }
 0x3bf   :  { %1582 = vrot.lane.b32.xlu2 %v1567_v7, %s1837_s7  ;;  %1576 = vrot.lane.b32.xlu1 %v1567_v7, %s1838_s9 }
 0x3c0   :  { %1570 = vrot.lane.b32.xlu0 %v1567_v7, %s1835_s22 }
 0x3c7   :  { %1585 = vrot.lane.b32.xlu2 %v1567_v7, %s1839_s28  ;;  %1579 = vrot.lane.b32.xlu1 %v1567_v7, %s1840_s29 }
 0x3c8   :  { %1573 = vrot.lane.b32.xlu0 %v1567_v7, %s1841_s30 }
 0x3d0   :  { %1588 = vrot.lane.b32.xlu0 %v1567_v7, %s1842_s11 }
 0x419   :  { %v1583_v12 = vpop.permute.xlu2 %1582 }
 0x421   :  { %v1586_v20 = vpop.permute.xlu2 %1585 }
 0x431   :  { %v1577_v41 = vpop.permute.xlu1 %1576 }
 0x432   :  { %v1571_v3 = vpop.permute.xlu0 %1570 }
 0x433   :  { %v1591_v57 = vsel %vm1465_vm7, %v1567_v7, %v1571_v3 }
 0x439   :  { %v1580_v54 = vpop.permute.xlu1 %1579 }
 0x43a   :  { %v1574_v23 = vpop.permute.xlu0 %1573 }
 0x43b   :  { %v1593_v26 = vsel %vm1592_vm14, %v1591_v57, %v1574_v23 }
 0x43c   :  { %v1595_v48 = vsel %vm1594_vm15, %v1593_v26, %v1577_v41 }
 0x43d   :  { %v1597_v58 = vsel %vm1596_vm0, %v1595_v48, %v1580_v54 }
 0x43e   :  { %v1599_v56 = vsel %vm1598_vm1, %v1597_v58, %v1583_v12 }
 0x43f   :  { %v1601_v18 = vsel %vm1600_vm2, %v1599_v56, %v1586_v20 }
 0x442   :  { %v1589_v1 = vpop.permute.xlu0 %1588 }
 0x443   :  { %v1603_v32 = vsel %vm1602_vm3, %v1601_v18, %v1589_v1 }
 0x444   :  { %v1605_v17 = vrot.slane %v1603_v32, 7 }
 0x446   :  { %v1607_v34 = vsel %vm1606_vm4, %v1603_v32, %v1605_v17  ;;  %v1608_v9 = vsel %vm1492_vm8, %v1603_v32, %v1605_v17 }
 0x447   :  { %v1609_v37 = vrot.slane %v1608_v9, 1  ;;  %v1610_v5 = vperm.slane %v1607_v34, 0  ;;  %v1611_v38 = vperm.slane %v1607_v34, 1 }
 0x449   :  { %v1612_v43 = vperm.slane %v1609_v37, 0  ;;  %v1613_v44 = vperm.slane %v1609_v37, 1  ;;  %v1618_v42 = vmul.f32 %v1610_v5, %v2489_v40  ;;  %v1619_v4 = vmul.f32 %v1611_v38, %v2520_v61  ;;  %v1748_v40 = vld [vmem:[%s2594_s0 + $0x8] sm:$0xff] }
 0x44a   :  { %v1620_v39 = vmul.f32 %v1610_v5, %v2505_v47  ;;  %v1621_v10 = vmul.f32 %v1611_v38, %v2523_v22  ;;  %v1749_v47 = vld [vmem:[%s2594_s0 + $0x10] sm:$0xff] }
 0x44b   :  { %v1622_v6 = vmul.f32 %v1612_v43, %v2510_v36  ;;  %v1623_v19 = vmul.f32 %v1613_v44, %v2526_v45  ;;  %v1624_v16 = vmul.f32 %v1612_v43, %v2515_v51  ;;  %v1626_v8 = vadd.f32 %v1747_v28, %v1618_v42  ;;  %v1750_v51 = vld [vmem:[%s2594_s0 + $0x18] sm:$0xff] }
 0x44c   :  { %v1627_v61 = vadd.f32 %v1748_v40, %v1619_v4  ;;  %v1628_v22 = vadd.f32 %v1749_v47, %v1620_v39  ;;  %v1625_v36 = vmul.f32 %v1613_v44, %v2529_v52  ;;  %v1629_v45 = vadd.f32 %v1750_v51, %v1621_v10  ;;  %v1753_v52 = vld [vmem:[%s2594_s0 + $0x30] sm:$0xff] }
 0x44d   :  { %v1630_v59 = vadd.f32 %v1751_v11, %v1622_v6  ;;  %1634 = vst [vmem:[#allocation7] sm:$0xff] %v1626_v8  ;;  %v1631_v29 = vadd.f32 %v1752_v63, %v1623_v19  ;;  %v1632_v13 = vadd.f32 %v1753_v52, %v1624_v16 }
 0x44e   :  { %1635 = vst [vmem:[#allocation7 + $0x8] sm:$0xff] %v1627_v61  ;;  %v1633_v15 = vadd.f32 %v1754_v14, %v1625_v36 }
 0x44f   :  { %1636 = vst [vmem:[#allocation7 + $0x10] sm:$0xff] %v1628_v22 }
 0x450   :  { %1637 = vst [vmem:[#allocation7 + $0x18] sm:$0xff] %v1629_v45 }
 0x451   :  { %1638 = vst [vmem:[#allocation7 + $0x20] sm:$0xff] %v1630_v59 }
 0x452   :  { %1639 = vst [vmem:[#allocation7 + $0x28] sm:$0xff] %v1631_v29 }
 0x453   :  { %1640 = vst [vmem:[#allocation7 + $0x30] sm:$0xff] %v1632_v13 }
 0x454   :  { %1641 = vst [vmem:[#allocation7 + $0x38] sm:$0xff] %v1633_v15 }
 0x455   :  { %1654 = dma.vmem_to_hbm [thread:$0]  %s1647_s3, 1024, %s1649_s8, [#allocation4], %s1834_s21, %s1834_s21, %s1835_s22  }
 0x456   :  { %1831 = dma.done.wait [#allocation4], 1024  }
 0x457   :  { %1832 = vsyncadd [#allocation4], 4294966272 }
 0x458   :  { %1659 = vsyncpa [#allocation3], 1 }
 0x459   :  { %1660 = vsyncpa [#allocation6], 1 }
 0x45a   :  { %1661 = vsyncpa [#allocation4], 1 }

</bundles_post_ra>
